<compile_context>
chip_gen: v7x
topology: tpu7x:2x2x1
jax: 0.10.0
libtpu: 0.0.40
codegen_flags: <defaults>
</compile_context>

<pallas_src>
from functools import partial

import jax
import jax.numpy as jnp
import numpy as np
from jax.experimental import pallas as pl
from jax.experimental.pallas import tpu as pltpu


def _round_up(x, m):
    return ((x + m - 1) // m) * m


def _vmem_limit_bytes(needed):
    """Scoped-VMEM request: working set + headroom, capped at ~75% of physical
    VMEM (v7x only has 64 MiB per TensorCore)."""
    try:
        cap = int(pltpu.get_tpu_info().vmem_capacity_bytes) * 3 // 4
    except Exception:
        cap = 48 * 1024 * 1024
    return int(max(16 * 1024 * 1024, min(needed * 3 // 2 + 8 * 1024 * 1024, cap)))


def _pick_tile_n(n_rows, requested):
    """Row tile: as large as requested / fits, but keep >=2 grid steps when the
    problem allows so both v7x TensorCores get work on the "parallel" axis."""
    t = max(8, min(requested, _round_up(n_rows, 8)))
    if _round_up(n_rows, t) // t < 2 and _round_up(n_rows, 8) >= 16:
        t = _round_up((n_rows + 1) // 2, 8)
    return t


# ------------------------------ kernel bodies --------------------------------

def _write_fourier_feats(x, lnw, lnb, feats_ref, *, gridsize, in_dim):
    """LayerNorm + Fourier features for one row tile, streamed into VMEM scratch.

    g-major layout:  feats[:, k*I:(k+1)*I]       = cos((k+1)*xn)
                     feats[:, (G+k)*I:(G+k+1)*I] = sin((k+1)*xn)
    Only 2 transcendentals per element (EUP); higher harmonics use the
    angle-addition recurrence on the VPU in f32, cast to the scratch dtype
    (bf16) only at the store.
    """
    mu = jnp.mean(x, axis=-1, keepdims=True)
    xc = x - mu
    var = jnp.mean(xc * xc, axis=-1, keepdims=True)      # biased var, torch LN
    xn = xc * jax.lax.rsqrt(var + 1e-5)
    xn = xn * lnw + lnb                                   # (1, I) broadcast

    c1 = jnp.cos(xn)
    s1 = jnp.sin(xn)
    fdt = feats_ref.dtype
    feats_ref[:, 0:in_dim] = c1.astype(fdt)
    feats_ref[:, gridsize * in_dim:(gridsize + 1) * in_dim] = s1.astype(fdt)
    cg, sg = c1, s1
    for k in range(1, gridsize):
        cg, sg = cg * c1 - sg * s1, sg * c1 + cg * s1
        feats_ref[:, k * in_dim:(k + 1) * in_dim] = cg.astype(fdt)
        feats_ref[:, (gridsize + k) * in_dim:(gridsize + k + 1) * in_dim] = (
            sg.astype(fdt))


def _fused_kan_kernel(*refs, in_dims, gridsize):
    """All FourierKAN layers on one (TN, in_dims[0]) row tile.

    refs = (x_ref, [lnw, lnb, w, b] * L, o_ref, feats_ref).  Intermediate
    activations stay on-chip (f32); only the last layer's padded, lane-dense
    output is written back to HBM.
    """
    num_layers = len(in_dims)
    x_ref = refs[0]
    o_ref = refs[1 + 4 * num_layers]
    feats_ref = refs[2 + 4 * num_layers]

    h = x_ref[...].astype(jnp.float32)
    for l in range(num_layers):
        lnw_ref, lnb_ref, w_ref, b_ref = refs[1 + 4 * l: 5 + 4 * l]
        in_dim = in_dims[l]
        _write_fourier_feats(h[:, :in_dim], lnw_ref[...], lnb_ref[...],
                             feats_ref, gridsize=gridsize, in_dim=in_dim)
        feats = feats_ref[:, :2 * gridsize * in_dim]          # bf16
        h = jnp.dot(feats, w_ref[...],                        # bf16 MXU, f32 acc
                    preferred_element_type=jnp.float32) + b_ref[...]
    o_ref[...] = h.astype(o_ref.dtype)


def _kan_layer_kernel(x_ref, lnw_ref, lnb_ref, w_ref, b_ref, o_ref, feats_ref,
                      *, gridsize, in_dim):
    """One FourierKAN layer; grid = (row tiles, output tiles).

    Fourier features depend only on the row tile, so they are computed once per
    row tile (inner "arbitrary" output-tile index 0) and reused from scratch.
    """
    @pl.when(pl.program_id(1) == 0)
    def _():
        _write_fourier_feats(x_ref[:, :in_dim].astype(jnp.float32),
                             lnw_ref[...], lnb_ref[...], feats_ref,
                             gridsize=gridsize, in_dim=in_dim)

    feats = feats_ref[:, :2 * gridsize * in_dim]
    y = jnp.dot(feats, w_ref[...], preferred_element_type=jnp.float32)
    o_ref[...] = (y + b_ref[...]).astype(o_ref.dtype)


# ------------------------------ JAX wrappers ----------------------------------

def _fused_vmem_bytes(tile_n, flat, feat_max):
    in_dim0 = flat[0]["in_dim"]
    out_pad_last = flat[-1]["out_pad"]
    max_w = max(max(f["in_dim"], f["out_pad"]) for f in flat)
    b = 2 * tile_n * in_dim0 * 4            # input row tile (double-buffered)
    b += 2 * tile_n * out_pad_last * 4      # output row tile (double-buffered)
    b += tile_n * feat_max * 2              # bf16 feature scratch
    b += 8 * tile_n * max_w * 4             # elementwise temporaries (c/s/xn/h)
    for f in flat:                          # single-buffered invariants
        b += f["w"].size * 2 + 4 * (f["b"].size + f["lnw"].size + f["lnb"].size)
    return b


def _fused_forward(x_pad, flat, gridsize, tile_n, feat_max):
    n_pad, in_dim0 = x_pad.shape
    out_pad_last = flat[-1]["out_pad"]

    in_specs = [pl.BlockSpec((tile_n, in_dim0), lambda i: (i, 0))]
    operands = [x_pad]
    for f in flat:
        in_dim, out_pad = f["in_dim"], f["out_pad"]
        for arr, shape in ((f["lnw"], (1, in_dim)),
                           (f["lnb"], (1, in_dim)),
                           (f["w"], (2 * gridsize * in_dim, out_pad)),
                           (f["b"], (1, out_pad))):
            in_specs.append(pl.BlockSpec(shape, lambda i: (0, 0),
                                         pipeline_mode=pl.Buffered(1)))
            operands.append(arr)

    kernel = partial(_fused_kan_kernel,
                     in_dims=tuple(f["in_dim"] for f in flat),
                     gridsize=gridsize)
    needed = _fused_vmem_bytes(tile_n, flat, feat_max)
    return pl.pallas_call(
        kernel,
        out_shape=jax.ShapeDtypeStruct((n_pad, out_pad_last), jnp.float32),
        grid_spec=pltpu.PrefetchScalarGridSpec(
            num_scalar_prefetch=0,
            grid=(n_pad // tile_n,),
            in_specs=in_specs,
            out_specs=pl.BlockSpec((tile_n, out_pad_last), lambda i: (i, 0)),
            scratch_shapes=[pltpu.VMEM((tile_n, feat_max), jnp.bfloat16)],
        ),
        compiler_params=pltpu.CompilerParams(
            dimension_semantics=("parallel",),
            vmem_limit_bytes=_vmem_limit_bytes(needed),
        ),
    )(*operands)


def _layer_forward_tiled(x_pad, f, gridsize, tile_n, tile_o):
    """Per-layer fallback for layers too large for the fused-VMEM budget."""
    n_pad, in_cols = x_pad.shape
    in_dim, out_pad = f["in_dim"], f["out_pad"]
    to = 256 if (tile_o >= 256 and out_pad % 256 == 0) else 128
    feat_w = 2 * gridsize * in_dim

    needed = (2 * tile_n * in_cols * 4 + 2 * tile_n * to * 4
              + tile_n * feat_w * 2 + 2 * feat_w * to * 2
              + 8 * tile_n * max(in_dim, to) * 4)
    kernel = partial(_kan_layer_kernel, gridsize=gridsize, in_dim=in_dim)
    return pl.pallas_call(
        kernel,
        out_shape=jax.ShapeDtypeStruct((n_pad, out_pad), jnp.float32),
        grid_spec=pltpu.PrefetchScalarGridSpec(
            num_scalar_prefetch=0,
            grid=(n_pad // tile_n, out_pad // to),
            in_specs=[
                pl.BlockSpec((tile_n, in_cols), lambda i, j: (i, 0)),
                pl.BlockSpec((1, in_dim), lambda i, j: (0, 0),
                             pipeline_mode=pl.Buffered(1)),
                pl.BlockSpec((1, in_dim), lambda i, j: (0, 0),
                             pipeline_mode=pl.Buffered(1)),
                pl.BlockSpec((feat_w, to), lambda i, j: (0, j)),
                pl.BlockSpec((1, to), lambda i, j: (0, j)),
            ],
            out_specs=pl.BlockSpec((tile_n, to), lambda i, j: (i, j)),
            scratch_shapes=[pltpu.VMEM((tile_n, feat_w), jnp.bfloat16)],
        ),
        compiler_params=pltpu.CompilerParams(
            dimension_semantics=("parallel", "arbitrary"),
            vmem_limit_bytes=_vmem_limit_bytes(needed),
        ),
    )(x_pad, f["lnw"], f["lnb"], f["w"], f["b"])


# ------------------------------ parameters ------------------------------------

def init_fourier_kan_params(key, layers_hidden, grid_size):
    """Deterministic parameter init mirroring the torch module's __init__."""
    params = []
    for in_dim, out_dim in zip(layers_hidden[:-1], layers_hidden[1:]):
        key, ck = jax.random.split(key)
        coeffs = jax.random.normal(ck, (2, out_dim, in_dim, grid_size),
                                   dtype=jnp.float32)
        coeffs = coeffs / (np.sqrt(in_dim) * np.sqrt(grid_size))
        params.append(dict(
            ln_w=jnp.ones((in_dim,), jnp.float32),     # nn.LayerNorm defaults
            ln_b=jnp.zeros((in_dim,), jnp.float32),
            coeffs=coeffs,
            bias=jnp.zeros((1, out_dim), jnp.float32),
        ))
    return params


def build_flat_params(params, grid_size):
    """One-time weight re-layout: (2, O, I, G) -> g-major (2*G*I, O_pad) bf16,
    done at parameter-build time so the per-call forward path carries no
    transpose / pad / cast HBM traffic."""
    flat = []
    for p in params:
        coeffs = p["coeffs"]
        _, out_dim, in_dim, g = coeffs.shape
        assert g == grid_size
        out_pad = _round_up(out_dim, 128)
        wc = jnp.transpose(coeffs[0], (2, 1, 0)).reshape(g * in_dim, out_dim)
        ws = jnp.transpose(coeffs[1], (2, 1, 0)).reshape(g * in_dim, out_dim)
        w = jnp.concatenate([wc, ws], axis=0)
        w = jnp.pad(w, ((0, 0), (0, out_pad - out_dim))).astype(jnp.bfloat16)
        b = jnp.pad(p["bias"].reshape(1, out_dim),
                    ((0, 0), (0, out_pad - out_dim))).astype(jnp.float32)
        flat.append(dict(
            lnw=p["ln_w"].reshape(1, in_dim).astype(jnp.float32),
            lnb=p["ln_b"].reshape(1, in_dim).astype(jnp.float32),
            w=w, b=b, in_dim=in_dim, out_dim=out_dim, out_pad=out_pad,
        ))
    return flat


def fourier_kan_forward(x, flat_params, grid_size, *, tile_n=256, tile_o=256,
                        fuse_vmem_budget=40 * 1024 * 1024):
    """FourierKAN.forward with normalize=False (torch default).

    Rows are padded once and sliced once; in the fused path intermediate
    activations never round-trip through HBM.
    """
    shp = x.shape
    h = x.reshape(-1, shp[-1]).astype(jnp.float32)
    n = h.shape[0]
    tn = _pick_tile_n(n, tile_n)
    n_pad = _round_up(n, tn)
    h = jnp.pad(h, ((0, n_pad - n), (0, 0)))

    feat_max = max(2 * grid_size * f["in_dim"] for f in flat_params)
    if _fused_vmem_bytes(tn, flat_params, feat_max) <= fuse_vmem_budget:
        h = _fused_forward(h, flat_params, grid_size, tn, feat_max)
    else:
        # TODO(synk): very large layers use per-layer calls with an output-tile
        #             grid axis; activations stay padded (n_pad, out_pad) in
        #             HBM between layers (no re-pad / re-slice churn).
        for f in flat_params:
            h = _layer_forward_tiled(h, f, grid_size, tn, tile_o)

    out_dim = flat_params[-1]["out_dim"]
    return h[:n, :out_dim].reshape(shp[:-1] + (out_dim,))


# ------------------------------ references ------------------------------------

def _ref_layer_f32(x2d, p, g):
    mu = x2d.mean(-1, keepdims=True)
    var = ((x2d - mu) ** 2).mean(-1, keepdims=True)
    xn = (x2d - mu) / jnp.sqrt(var + 1e-5) * p["ln_w"] + p["ln_b"]
    k = jnp.arange(1, g + 1, dtype=jnp.float32).reshape(1, 1, 1, g)
    xr = xn.reshape(xn.shape[0], 1, xn.shape[1], 1)
    c = jnp.cos(k * xr)
    s = jnp.sin(k * xr)
    y = jnp.sum(c * p["coeffs"][0:1], axis=(-2, -1))
    y = y + jnp.sum(s * p["coeffs"][1:2], axis=(-2, -1))
    return y + p["bias"]


def _ref_forward_f32(x, params, g):
    shp = x.shape
    h = x.reshape(-1, shp[-1])
    for p in params:
        h = _ref_layer_f32(h, p, g)
    return h.reshape(shp[:-1] + (h.shape[-1],))


def _ref_forward_matched(x, flat, g):
    """Same math/precision as the kernel (bf16 MXU inputs, f32 accumulation),
    but with exact trig instead of the in-kernel angle-addition recurrence."""
    shp = x.shape
    h = x.reshape(-1, shp[-1]).astype(jnp.float32)
    for f in flat:
        in_dim, out_dim = f["in_dim"], f["out_dim"]
        xx = h[:, :in_dim]
        mu = xx.mean(-1, keepdims=True)
        var = ((xx - mu) ** 2).mean(-1, keepdims=True)
        xn = (xx - mu) * jax.lax.rsqrt(var + 1e-5) * f["lnw"] + f["lnb"]
        cos_blocks = [jnp.cos(k * xn) for k in range(1, g + 1)]
        sin_blocks = [jnp.sin(k * xn) for k in range(1, g + 1)]
        feats = jnp.concatenate(cos_blocks + sin_blocks, axis=-1)
        y = jnp.dot(feats.astype(jnp.bfloat16), f["w"],
                    preferred_element_type=jnp.float32) + f["b"]
        h = y[:, :out_dim]
    return h.reshape(shp[:-1] + (h.shape[-1],))


# ----------------------------------- main --------------------------------------

if __name__ == "__main__":
    key = jax.random.PRNGKey(0)
    kx, kp = jax.random.split(key)

    # Shapes consistent with the module: x (batch=2, seq=8, in=32),
    # FourierKAN(layers_hidden=[32, 64, 16], grid_size=8).
    layers_hidden = [32, 64, 16]
    grid_size = 8
    x = jax.random.normal(kx, (2, 8, layers_hidden[0]), dtype=jnp.float32)

    params = init_fourier_kan_params(kp, layers_hidden, grid_size)
    flat = build_flat_params(params, grid_size)

    out = fourier_kan_forward(x, flat, grid_size)
    out = jax.block_until_ready(out)
    assert out.shape == (2, 8, layers_hidden[-1])

    # Matched-precision reference (same bf16 MXU inputs, f32 accumulation).
    ref_m = jax.block_until_ready(_ref_forward_matched(x, flat, grid_size))
    np.testing.assert_allclose(np.asarray(out), np.asarray(ref_m),
                               rtol=1e-2, atol=1e-2)

    # Exact f32 reference mirroring the torch module; looser bound covers the
    # intentional bf16-MXU-input drift across the two layers.
    ref = jax.block_until_ready(_ref_forward_f32(x, params, grid_size))
    np.testing.assert_allclose(np.asarray(out), np.asarray(ref),
                               rtol=1.5e-1, atol=1.5e-1)

    print("KERNEL_OK")
</pallas_src>

<mosaic_0001>
module attributes {stable_mosaic.version = 11 : i64} {
  func.func @_fused_kan_kernel(%arg0: i32, %arg1: memref<8x32xf32, #tpu.memory_space<vmem>>, %arg2: memref<1x32xf32, #tpu.memory_space<vmem>>, %arg3: memref<1x32xf32, #tpu.memory_space<vmem>>, %arg4: memref<512x128xbf16, #tpu.memory_space<vmem>>, %arg5: memref<1x128xf32, #tpu.memory_space<vmem>>, %arg6: memref<1x64xf32, #tpu.memory_space<vmem>>, %arg7: memref<1x64xf32, #tpu.memory_space<vmem>>, %arg8: memref<1024x128xbf16, #tpu.memory_space<vmem>>, %arg9: memref<1x128xf32, #tpu.memory_space<vmem>>, %arg10: memref<8x128xf32, #tpu.memory_space<vmem>>, %arg11: memref<8x1024xbf16, #tpu.memory_space<vmem>>) attributes {dimension_semantics = [#tpu.dimension_semantics<parallel>], iteration_bounds = array<i64: 2>, scalar_prefetch = 0 : i64, scratch_operands = 1 : i64, tpu.core_type = #tpu.core_type<tc>, window_params = [{transform_indices = @transform_0, window_bounds = array<i64: 8, 32>}, {pipeline_mode = #tpu.pipeline_mode<synchronous>, transform_indices = @transform_1, window_bounds = array<i64: 1, 32>}, {pipeline_mode = #tpu.pipeline_mode<synchronous>, transform_indices = @transform_2, window_bounds = array<i64: 1, 32>}, {pipeline_mode = #tpu.pipeline_mode<synchronous>, transform_indices = @transform_3, window_bounds = array<i64: 512, 128>}, {pipeline_mode = #tpu.pipeline_mode<synchronous>, transform_indices = @transform_4, window_bounds = array<i64: 1, 128>}, {pipeline_mode = #tpu.pipeline_mode<synchronous>, transform_indices = @transform_5, window_bounds = array<i64: 1, 64>}, {pipeline_mode = #tpu.pipeline_mode<synchronous>, transform_indices = @transform_6, window_bounds = array<i64: 1, 64>}, {pipeline_mode = #tpu.pipeline_mode<synchronous>, transform_indices = @transform_7, window_bounds = array<i64: 1024, 128>}, {pipeline_mode = #tpu.pipeline_mode<synchronous>, transform_indices = @transform_8, window_bounds = array<i64: 1, 128>}, {transform_indices = @transform_9, window_bounds = array<i64: 8, 128>}]} {
    %c0 = arith.constant 0 : index
    %c0_0 = arith.constant 0 : index
    %0 = vector.load %arg1[%c0, %c0_0] : memref<8x32xf32, #tpu.memory_space<vmem>>, vector<8x32xf32>
    %c0_1 = arith.constant 0 : index
    %c0_2 = arith.constant 0 : index
    %1 = vector.load %arg2[%c0_1, %c0_2] : memref<1x32xf32, #tpu.memory_space<vmem>>, vector<1x32xf32>
    %c0_3 = arith.constant 0 : index
    %c0_4 = arith.constant 0 : index
    %2 = vector.load %arg3[%c0_3, %c0_4] : memref<1x32xf32, #tpu.memory_space<vmem>>, vector<1x32xf32>
    %cst = arith.constant dense<0.000000e+00> : vector<8xf32>
    %3 = vector.multi_reduction <add>, %0, %cst [1] : vector<8x32xf32> to vector<8xf32>
    %4 = vector.shape_cast %3 : vector<8xf32> to vector<8x1xf32>
    %cst_5 = arith.constant 3.200000e+01 : f32
    %5 = vector.broadcast %cst_5 : f32 to vector<8x1xf32>
    %6 = arith.divf %4, %5 : vector<8x1xf32>
    %7 = vector.broadcast %6 : vector<8x1xf32> to vector<8x32xf32>
    %8 = arith.subf %0, %7 : vector<8x32xf32>
    %9 = arith.mulf %8, %8 : vector<8x32xf32>
    %cst_6 = arith.constant dense<0.000000e+00> : vector<8xf32>
    %10 = vector.multi_reduction <add>, %9, %cst_6 [1] : vector<8x32xf32> to vector<8xf32>
    %11 = vector.shape_cast %10 : vector<8xf32> to vector<8x1xf32>
    %cst_7 = arith.constant 3.200000e+01 : f32
    %12 = vector.broadcast %cst_7 : f32 to vector<8x1xf32>
    %13 = arith.divf %11, %12 : vector<8x1xf32>
    %cst_8 = arith.constant 9.99999974E-6 : f32
    %14 = vector.broadcast %cst_8 : f32 to vector<8x1xf32>
    %15 = arith.addf %13, %14 : vector<8x1xf32>
    %16 = math.rsqrt %15 : vector<8x1xf32>
    %17 = vector.broadcast %16 : vector<8x1xf32> to vector<8x32xf32>
    %18 = arith.mulf %8, %17 : vector<8x32xf32>
    %19 = vector.broadcast %1 : vector<1x32xf32> to vector<8x32xf32>
    %20 = arith.mulf %18, %19 : vector<8x32xf32>
    %21 = vector.broadcast %2 : vector<1x32xf32> to vector<8x32xf32>
    %22 = arith.addf %20, %21 : vector<8x32xf32>
    %23 = math.cos %22 : vector<8x32xf32>
    %24 = math.sin %22 : vector<8x32xf32>
    %25 = arith.truncf %23 : vector<8x32xf32> to vector<8x32xbf16>
    %c0_9 = arith.constant 0 : index
    %c0_10 = arith.constant 0 : index
    %26 = vector.load %arg11[%c0_9, %c0_10] : memref<8x1024xbf16, #tpu.memory_space<vmem>>, vector<8x32xbf16>
    tpu.vector_store %arg11[%c0_9, %c0_10], %25 {strides = array<i32>} : memref<8x1024xbf16, #tpu.memory_space<vmem>>, vector<8x32xbf16>,
    %27 = arith.truncf %24 : vector<8x32xf32> to vector<8x32xbf16>
    %c0_11 = arith.constant 0 : index
    %c256 = arith.constant 256 : index
    %28 = vector.load %arg11[%c0_11, %c256] : memref<8x1024xbf16, #tpu.memory_space<vmem>>, vector<8x32xbf16>
    tpu.vector_store %arg11[%c0_11, %c256], %27 {strides = array<i32>} : memref<8x1024xbf16, #tpu.memory_space<vmem>>, vector<8x32xbf16>,
    %29 = arith.mulf %23, %23 : vector<8x32xf32>
    %30 = arith.mulf %24, %24 : vector<8x32xf32>
    %31 = arith.subf %29, %30 : vector<8x32xf32>
    %32 = arith.mulf %24, %23 : vector<8x32xf32>
    %33 = arith.mulf %23, %24 : vector<8x32xf32>
    %34 = arith.addf %32, %33 : vector<8x32xf32>
    %35 = arith.truncf %31 : vector<8x32xf32> to vector<8x32xbf16>
    %c0_12 = arith.constant 0 : index
    %c32 = arith.constant 32 : index
    %36 = vector.load %arg11[%c0_12, %c32] : memref<8x1024xbf16, #tpu.memory_space<vmem>>, vector<8x32xbf16>
    tpu.vector_store %arg11[%c0_12, %c32], %35 {strides = array<i32>} : memref<8x1024xbf16, #tpu.memory_space<vmem>>, vector<8x32xbf16>,
    %37 = arith.truncf %34 : vector<8x32xf32> to vector<8x32xbf16>
    %c0_13 = arith.constant 0 : index
    %c288 = arith.constant 288 : index
    %38 = vector.load %arg11[%c0_13, %c288] : memref<8x1024xbf16, #tpu.memory_space<vmem>>, vector<8x32xbf16>
    tpu.vector_store %arg11[%c0_13, %c288], %37 {strides = array<i32>} : memref<8x1024xbf16, #tpu.memory_space<vmem>>, vector<8x32xbf16>,
    %39 = arith.mulf %31, %23 : vector<8x32xf32>
    %40 = arith.mulf %34, %24 : vector<8x32xf32>
    %41 = arith.subf %39, %40 : vector<8x32xf32>
    %42 = arith.mulf %34, %23 : vector<8x32xf32>
    %43 = arith.mulf %31, %24 : vector<8x32xf32>
    %44 = arith.addf %42, %43 : vector<8x32xf32>
    %45 = arith.truncf %41 : vector<8x32xf32> to vector<8x32xbf16>
    %c0_14 = arith.constant 0 : index
    %c64 = arith.constant 64 : index
    %46 = vector.load %arg11[%c0_14, %c64] : memref<8x1024xbf16, #tpu.memory_space<vmem>>, vector<8x32xbf16>
    tpu.vector_store %arg11[%c0_14, %c64], %45 {strides = array<i32>} : memref<8x1024xbf16, #tpu.memory_space<vmem>>, vector<8x32xbf16>,
    %47 = arith.truncf %44 : vector<8x32xf32> to vector<8x32xbf16>
    %c0_15 = arith.constant 0 : index
    %c320 = arith.constant 320 : index
    %48 = vector.load %arg11[%c0_15, %c320] : memref<8x1024xbf16, #tpu.memory_space<vmem>>, vector<8x32xbf16>
    tpu.vector_store %arg11[%c0_15, %c320], %47 {strides = array<i32>} : memref<8x1024xbf16, #tpu.memory_space<vmem>>, vector<8x32xbf16>,
    %49 = arith.mulf %41, %23 : vector<8x32xf32>
    %50 = arith.mulf %44, %24 : vector<8x32xf32>
    %51 = arith.subf %49, %50 : vector<8x32xf32>
    %52 = arith.mulf %44, %23 : vector<8x32xf32>
    %53 = arith.mulf %41, %24 : vector<8x32xf32>
    %54 = arith.addf %52, %53 : vector<8x32xf32>
    %55 = arith.truncf %51 : vector<8x32xf32> to vector<8x32xbf16>
    %c0_16 = arith.constant 0 : index
    %c96 = arith.constant 96 : index
    %56 = vector.load %arg11[%c0_16, %c96] : memref<8x1024xbf16, #tpu.memory_space<vmem>>, vector<8x32xbf16>
    tpu.vector_store %arg11[%c0_16, %c96], %55 {strides = array<i32>} : memref<8x1024xbf16, #tpu.memory_space<vmem>>, vector<8x32xbf16>,
    %57 = arith.truncf %54 : vector<8x32xf32> to vector<8x32xbf16>
    %c0_17 = arith.constant 0 : index
    %c352 = arith.constant 352 : index
    %58 = vector.load %arg11[%c0_17, %c352] : memref<8x1024xbf16, #tpu.memory_space<vmem>>, vector<8x32xbf16>
    tpu.vector_store %arg11[%c0_17, %c352], %57 {strides = array<i32>} : memref<8x1024xbf16, #tpu.memory_space<vmem>>, vector<8x32xbf16>,
    %59 = arith.mulf %51, %23 : vector<8x32xf32>
    %60 = arith.mulf %54, %24 : vector<8x32xf32>
    %61 = arith.subf %59, %60 : vector<8x32xf32>
    %62 = arith.mulf %54, %23 : vector<8x32xf32>
    %63 = arith.mulf %51, %24 : vector<8x32xf32>
    %64 = arith.addf %62, %63 : vector<8x32xf32>
    %65 = arith.truncf %61 : vector<8x32xf32> to vector<8x32xbf16>
    %c0_18 = arith.constant 0 : index
    %c128 = arith.constant 128 : index
    %66 = vector.load %arg11[%c0_18, %c128] : memref<8x1024xbf16, #tpu.memory_space<vmem>>, vector<8x32xbf16>
    tpu.vector_store %arg11[%c0_18, %c128], %65 {strides = array<i32>} : memref<8x1024xbf16, #tpu.memory_space<vmem>>, vector<8x32xbf16>,
    %67 = arith.truncf %64 : vector<8x32xf32> to vector<8x32xbf16>
    %c0_19 = arith.constant 0 : index
    %c384 = arith.constant 384 : index
    %68 = vector.load %arg11[%c0_19, %c384] : memref<8x1024xbf16, #tpu.memory_space<vmem>>, vector<8x32xbf16>
    tpu.vector_store %arg11[%c0_19, %c384], %67 {strides = array<i32>} : memref<8x1024xbf16, #tpu.memory_space<vmem>>, vector<8x32xbf16>,
    %69 = arith.mulf %61, %23 : vector<8x32xf32>
    %70 = arith.mulf %64, %24 : vector<8x32xf32>
    %71 = arith.subf %69, %70 : vector<8x32xf32>
    %72 = arith.mulf %64, %23 : vector<8x32xf32>
    %73 = arith.mulf %61, %24 : vector<8x32xf32>
    %74 = arith.addf %72, %73 : vector<8x32xf32>
    %75 = arith.truncf %71 : vector<8x32xf32> to vector<8x32xbf16>
    %c0_20 = arith.constant 0 : index
    %c160 = arith.constant 160 : index
    %76 = vector.load %arg11[%c0_20, %c160] : memref<8x1024xbf16, #tpu.memory_space<vmem>>, vector<8x32xbf16>
    tpu.vector_store %arg11[%c0_20, %c160], %75 {strides = array<i32>} : memref<8x1024xbf16, #tpu.memory_space<vmem>>, vector<8x32xbf16>,
    %77 = arith.truncf %74 : vector<8x32xf32> to vector<8x32xbf16>
    %c0_21 = arith.constant 0 : index
    %c416 = arith.constant 416 : index
    %78 = vector.load %arg11[%c0_21, %c416] : memref<8x1024xbf16, #tpu.memory_space<vmem>>, vector<8x32xbf16>
    tpu.vector_store %arg11[%c0_21, %c416], %77 {strides = array<i32>} : memref<8x1024xbf16, #tpu.memory_space<vmem>>, vector<8x32xbf16>,
    %79 = arith.mulf %71, %23 : vector<8x32xf32>
    %80 = arith.mulf %74, %24 : vector<8x32xf32>
    %81 = arith.subf %79, %80 : vector<8x32xf32>
    %82 = arith.mulf %74, %23 : vector<8x32xf32>
    %83 = arith.mulf %71, %24 : vector<8x32xf32>
    %84 = arith.addf %82, %83 : vector<8x32xf32>
    %85 = arith.truncf %81 : vector<8x32xf32> to vector<8x32xbf16>
    %c0_22 = arith.constant 0 : index
    %c192 = arith.constant 192 : index
    %86 = vector.load %arg11[%c0_22, %c192] : memref<8x1024xbf16, #tpu.memory_space<vmem>>, vector<8x32xbf16>
    tpu.vector_store %arg11[%c0_22, %c192], %85 {strides = array<i32>} : memref<8x1024xbf16, #tpu.memory_space<vmem>>, vector<8x32xbf16>,
    %87 = arith.truncf %84 : vector<8x32xf32> to vector<8x32xbf16>
    %c0_23 = arith.constant 0 : index
    %c448 = arith.constant 448 : index
    %88 = vector.load %arg11[%c0_23, %c448] : memref<8x1024xbf16, #tpu.memory_space<vmem>>, vector<8x32xbf16>
    tpu.vector_store %arg11[%c0_23, %c448], %87 {strides = array<i32>} : memref<8x1024xbf16, #tpu.memory_space<vmem>>, vector<8x32xbf16>,
    %89 = arith.mulf %81, %23 : vector<8x32xf32>
    %90 = arith.mulf %84, %24 : vector<8x32xf32>
    %91 = arith.subf %89, %90 : vector<8x32xf32>
    %92 = arith.mulf %84, %23 : vector<8x32xf32>
    %93 = arith.mulf %81, %24 : vector<8x32xf32>
    %94 = arith.addf %92, %93 : vector<8x32xf32>
    %95 = arith.truncf %91 : vector<8x32xf32> to vector<8x32xbf16>
    %c0_24 = arith.constant 0 : index
    %c224 = arith.constant 224 : index
    %96 = vector.load %arg11[%c0_24, %c224] : memref<8x1024xbf16, #tpu.memory_space<vmem>>, vector<8x32xbf16>
    tpu.vector_store %arg11[%c0_24, %c224], %95 {strides = array<i32>} : memref<8x1024xbf16, #tpu.memory_space<vmem>>, vector<8x32xbf16>,
    %97 = arith.truncf %94 : vector<8x32xf32> to vector<8x32xbf16>
    %c0_25 = arith.constant 0 : index
    %c480 = arith.constant 480 : index
    %98 = vector.load %arg11[%c0_25, %c480] : memref<8x1024xbf16, #tpu.memory_space<vmem>>, vector<8x32xbf16>
    tpu.vector_store %arg11[%c0_25, %c480], %97 {strides = array<i32>} : memref<8x1024xbf16, #tpu.memory_space<vmem>>, vector<8x32xbf16>,
    %c0_26 = arith.constant 0 : index
    %c0_27 = arith.constant 0 : index
    %99 = vector.load %arg11[%c0_26, %c0_27] : memref<8x1024xbf16, #tpu.memory_space<vmem>>, vector<8x512xbf16>
    %c0_28 = arith.constant 0 : index
    %c0_29 = arith.constant 0 : index
    %100 = vector.load %arg4[%c0_28, %c0_29] : memref<512x128xbf16, #tpu.memory_space<vmem>>, vector<512x128xbf16>
    %cst_30 = arith.constant dense<0.000000e+00> : vector<8x128xf32>
    %101 = tpu.matmul %99, %100, %cst_30 {dimension_numbers = #tpu.dot_dimension_numbers<[1], [0], [0], [1], [0, 0, 1, 1], [], []>} : vector<8x512xbf16>, vector<512x128xbf16>, vector<8x128xf32> -> vector<8x128xf32>
    %c0_31 = arith.constant 0 : index
    %c0_32 = arith.constant 0 : index
    %102 = vector.load %arg5[%c0_31, %c0_32] : memref<1x128xf32, #tpu.memory_space<vmem>>, vector<1x128xf32>
    %103 = vector.broadcast %102 : vector<1x128xf32> to vector<8x128xf32>
    %104 = arith.addf %101, %103 : vector<8x128xf32>
    %105 = vector.extract_strided_slice %104 {offsets = [0, 0], sizes = [8, 64], strides = [1, 1]} : vector<8x128xf32> to vector<8x64xf32>
    %c0_33 = arith.constant 0 : index
    %c0_34 = arith.constant 0 : index
    %106 = vector.load %arg6[%c0_33, %c0_34] : memref<1x64xf32, #tpu.memory_space<vmem>>, vector<1x64xf32>
    %c0_35 = arith.constant 0 : index
    %c0_36 = arith.constant 0 : index
    %107 = vector.load %arg7[%c0_35, %c0_36] : memref<1x64xf32, #tpu.memory_space<vmem>>, vector<1x64xf32>
    %cst_37 = arith.constant dense<0.000000e+00> : vector<8xf32>
    %108 = vector.multi_reduction <add>, %105, %cst_37 [1] : vector<8x64xf32> to vector<8xf32>
    %109 = vector.shape_cast %108 : vector<8xf32> to vector<8x1xf32>
    %cst_38 = arith.constant 6.400000e+01 : f32
    %110 = vector.broadcast %cst_38 : f32 to vector<8x1xf32>
    %111 = arith.divf %109, %110 : vector<8x1xf32>
    %112 = vector.broadcast %111 : vector<8x1xf32> to vector<8x64xf32>
    %113 = arith.subf %105, %112 : vector<8x64xf32>
    %114 = arith.mulf %113, %113 : vector<8x64xf32>
    %cst_39 = arith.constant dense<0.000000e+00> : vector<8xf32>
    %115 = vector.multi_reduction <add>, %114, %cst_39 [1] : vector<8x64xf32> to vector<8xf32>
    %116 = vector.shape_cast %115 : vector<8xf32> to vector<8x1xf32>
    %cst_40 = arith.constant 6.400000e+01 : f32
    %117 = vector.broadcast %cst_40 : f32 to vector<8x1xf32>
    %118 = arith.divf %116, %117 : vector<8x1xf32>
    %cst_41 = arith.constant 9.99999974E-6 : f32
    %119 = vector.broadcast %cst_41 : f32 to vector<8x1xf32>
    %120 = arith.addf %118, %119 : vector<8x1xf32>
    %121 = math.rsqrt %120 : vector<8x1xf32>
    %122 = vector.broadcast %121 : vector<8x1xf32> to vector<8x64xf32>
    %123 = arith.mulf %113, %122 : vector<8x64xf32>
    %124 = vector.broadcast %106 : vector<1x64xf32> to vector<8x64xf32>
    %125 = arith.mulf %123, %124 : vector<8x64xf32>
    %126 = vector.broadcast %107 : vector<1x64xf32> to vector<8x64xf32>
    %127 = arith.addf %125, %126 : vector<8x64xf32>
    %128 = math.cos %127 : vector<8x64xf32>
    %129 = math.sin %127 : vector<8x64xf32>
    %130 = arith.truncf %128 : vector<8x64xf32> to vector<8x64xbf16>
    %c0_42 = arith.constant 0 : index
    %c0_43 = arith.constant 0 : index
    %131 = vector.load %arg11[%c0_42, %c0_43] : memref<8x1024xbf16, #tpu.memory_space<vmem>>, vector<8x64xbf16>
    tpu.vector_store %arg11[%c0_42, %c0_43], %130 {strides = array<i32>} : memref<8x1024xbf16, #tpu.memory_space<vmem>>, vector<8x64xbf16>,
    %132 = arith.truncf %129 : vector<8x64xf32> to vector<8x64xbf16>
    %c0_44 = arith.constant 0 : index
    %c512 = arith.constant 512 : index
    %133 = vector.load %arg11[%c0_44, %c512] : memref<8x1024xbf16, #tpu.memory_space<vmem>>, vector<8x64xbf16>
    tpu.vector_store %arg11[%c0_44, %c512], %132 {strides = array<i32>} : memref<8x1024xbf16, #tpu.memory_space<vmem>>, vector<8x64xbf16>,
    %134 = arith.mulf %128, %128 : vector<8x64xf32>
    %135 = arith.mulf %129, %129 : vector<8x64xf32>
    %136 = arith.subf %134, %135 : vector<8x64xf32>
    %137 = arith.mulf %129, %128 : vector<8x64xf32>
    %138 = arith.mulf %128, %129 : vector<8x64xf32>
    %139 = arith.addf %137, %138 : vector<8x64xf32>
    %140 = arith.truncf %136 : vector<8x64xf32> to vector<8x64xbf16>
    %c0_45 = arith.constant 0 : index
    %c64_46 = arith.constant 64 : index
    %141 = vector.load %arg11[%c0_45, %c64_46] : memref<8x1024xbf16, #tpu.memory_space<vmem>>, vector<8x64xbf16>
    tpu.vector_store %arg11[%c0_45, %c64_46], %140 {strides = array<i32>} : memref<8x1024xbf16, #tpu.memory_space<vmem>>, vector<8x64xbf16>,
    %142 = arith.truncf %139 : vector<8x64xf32> to vector<8x64xbf16>
    %c0_47 = arith.constant 0 : index
    %c576 = arith.constant 576 : index
    %143 = vector.load %arg11[%c0_47, %c576] : memref<8x1024xbf16, #tpu.memory_space<vmem>>, vector<8x64xbf16>
    tpu.vector_store %arg11[%c0_47, %c576], %142 {strides = array<i32>} : memref<8x1024xbf16, #tpu.memory_space<vmem>>, vector<8x64xbf16>,
    %144 = arith.mulf %136, %128 : vector<8x64xf32>
    %145 = arith.mulf %139, %129 : vector<8x64xf32>
    %146 = arith.subf %144, %145 : vector<8x64xf32>
    %147 = arith.mulf %139, %128 : vector<8x64xf32>
    %148 = arith.mulf %136, %129 : vector<8x64xf32>
    %149 = arith.addf %147, %148 : vector<8x64xf32>
    %150 = arith.truncf %146 : vector<8x64xf32> to vector<8x64xbf16>
    %c0_48 = arith.constant 0 : index
    %c128_49 = arith.constant 128 : index
    %151 = vector.load %arg11[%c0_48, %c128_49] : memref<8x1024xbf16, #tpu.memory_space<vmem>>, vector<8x64xbf16>
    tpu.vector_store %arg11[%c0_48, %c128_49], %150 {strides = array<i32>} : memref<8x1024xbf16, #tpu.memory_space<vmem>>, vector<8x64xbf16>,
    %152 = arith.truncf %149 : vector<8x64xf32> to vector<8x64xbf16>
    %c0_50 = arith.constant 0 : index
    %c640 = arith.constant 640 : index
    %153 = vector.load %arg11[%c0_50, %c640] : memref<8x1024xbf16, #tpu.memory_space<vmem>>, vector<8x64xbf16>
    tpu.vector_store %arg11[%c0_50, %c640], %152 {strides = array<i32>} : memref<8x1024xbf16, #tpu.memory_space<vmem>>, vector<8x64xbf16>,
    %154 = arith.mulf %146, %128 : vector<8x64xf32>
    %155 = arith.mulf %149, %129 : vector<8x64xf32>
    %156 = arith.subf %154, %155 : vector<8x64xf32>
    %157 = arith.mulf %149, %128 : vector<8x64xf32>
    %158 = arith.mulf %146, %129 : vector<8x64xf32>
    %159 = arith.addf %157, %158 : vector<8x64xf32>
    %160 = arith.truncf %156 : vector<8x64xf32> to vector<8x64xbf16>
    %c0_51 = arith.constant 0 : index
    %c192_52 = arith.constant 192 : index
    %161 = vector.load %arg11[%c0_51, %c192_52] : memref<8x1024xbf16, #tpu.memory_space<vmem>>, vector<8x64xbf16>
    tpu.vector_store %arg11[%c0_51, %c192_52], %160 {strides = array<i32>} : memref<8x1024xbf16, #tpu.memory_space<vmem>>, vector<8x64xbf16>,
    %162 = arith.truncf %159 : vector<8x64xf32> to vector<8x64xbf16>
    %c0_53 = arith.constant 0 : index
    %c704 = arith.constant 704 : index
    %163 = vector.load %arg11[%c0_53, %c704] : memref<8x1024xbf16, #tpu.memory_space<vmem>>, vector<8x64xbf16>
    tpu.vector_store %arg11[%c0_53, %c704], %162 {strides = array<i32>} : memref<8x1024xbf16, #tpu.memory_space<vmem>>, vector<8x64xbf16>,
    %164 = arith.mulf %156, %128 : vector<8x64xf32>
    %165 = arith.mulf %159, %129 : vector<8x64xf32>
    %166 = arith.subf %164, %165 : vector<8x64xf32>
    %167 = arith.mulf %159, %128 : vector<8x64xf32>
    %168 = arith.mulf %156, %129 : vector<8x64xf32>
    %169 = arith.addf %167, %168 : vector<8x64xf32>
    %170 = arith.truncf %166 : vector<8x64xf32> to vector<8x64xbf16>
    %c0_54 = arith.constant 0 : index
    %c256_55 = arith.constant 256 : index
    %171 = vector.load %arg11[%c0_54, %c256_55] : memref<8x1024xbf16, #tpu.memory_space<vmem>>, vector<8x64xbf16>
    tpu.vector_store %arg11[%c0_54, %c256_55], %170 {strides = array<i32>} : memref<8x1024xbf16, #tpu.memory_space<vmem>>, vector<8x64xbf16>,
    %172 = arith.truncf %169 : vector<8x64xf32> to vector<8x64xbf16>
    %c0_56 = arith.constant 0 : index
    %c768 = arith.constant 768 : index
    %173 = vector.load %arg11[%c0_56, %c768] : memref<8x1024xbf16, #tpu.memory_space<vmem>>, vector<8x64xbf16>
    tpu.vector_store %arg11[%c0_56, %c768], %172 {strides = array<i32>} : memref<8x1024xbf16, #tpu.memory_space<vmem>>, vector<8x64xbf16>,
    %174 = arith.mulf %166, %128 : vector<8x64xf32>
    %175 = arith.mulf %169, %129 : vector<8x64xf32>
    %176 = arith.subf %174, %175 : vector<8x64xf32>
    %177 = arith.mulf %169, %128 : vector<8x64xf32>
    %178 = arith.mulf %166, %129 : vector<8x64xf32>
    %179 = arith.addf %177, %178 : vector<8x64xf32>
    %180 = arith.truncf %176 : vector<8x64xf32> to vector<8x64xbf16>
    %c0_57 = arith.constant 0 : index
    %c320_58 = arith.constant 320 : index
    %181 = vector.load %arg11[%c0_57, %c320_58] : memref<8x1024xbf16, #tpu.memory_space<vmem>>, vector<8x64xbf16>
    tpu.vector_store %arg11[%c0_57, %c320_58], %180 {strides = array<i32>} : memref<8x1024xbf16, #tpu.memory_space<vmem>>, vector<8x64xbf16>,
    %182 = arith.truncf %179 : vector<8x64xf32> to vector<8x64xbf16>
    %c0_59 = arith.constant 0 : index
    %c832 = arith.constant 832 : index
    %183 = vector.load %arg11[%c0_59, %c832] : memref<8x1024xbf16, #tpu.memory_space<vmem>>, vector<8x64xbf16>
    tpu.vector_store %arg11[%c0_59, %c832], %182 {strides = array<i32>} : memref<8x1024xbf16, #tpu.memory_space<vmem>>, vector<8x64xbf16>,
    %184 = arith.mulf %176, %128 : vector<8x64xf32>
    %185 = arith.mulf %179, %129 : vector<8x64xf32>
    %186 = arith.subf %184, %185 : vector<8x64xf32>
    %187 = arith.mulf %179, %128 : vector<8x64xf32>
    %188 = arith.mulf %176, %129 : vector<8x64xf32>
    %189 = arith.addf %187, %188 : vector<8x64xf32>
    %190 = arith.truncf %186 : vector<8x64xf32> to vector<8x64xbf16>
    %c0_60 = arith.constant 0 : index
    %c384_61 = arith.constant 384 : index
    %191 = vector.load %arg11[%c0_60, %c384_61] : memref<8x1024xbf16, #tpu.memory_space<vmem>>, vector<8x64xbf16>
    tpu.vector_store %arg11[%c0_60, %c384_61], %190 {strides = array<i32>} : memref<8x1024xbf16, #tpu.memory_space<vmem>>, vector<8x64xbf16>,
    %192 = arith.truncf %189 : vector<8x64xf32> to vector<8x64xbf16>
    %c0_62 = arith.constant 0 : index
    %c896 = arith.constant 896 : index
    %193 = vector.load %arg11[%c0_62, %c896] : memref<8x1024xbf16, #tpu.memory_space<vmem>>, vector<8x64xbf16>
    tpu.vector_store %arg11[%c0_62, %c896], %192 {strides = array<i32>} : memref<8x1024xbf16, #tpu.memory_space<vmem>>, vector<8x64xbf16>,
    %194 = arith.mulf %186, %128 : vector<8x64xf32>
    %195 = arith.mulf %189, %129 : vector<8x64xf32>
    %196 = arith.subf %194, %195 : vector<8x64xf32>
    %197 = arith.mulf %189, %128 : vector<8x64xf32>
    %198 = arith.mulf %186, %129 : vector<8x64xf32>
    %199 = arith.addf %197, %198 : vector<8x64xf32>
    %200 = arith.truncf %196 : vector<8x64xf32> to vector<8x64xbf16>
    %c0_63 = arith.constant 0 : index
    %c448_64 = arith.constant 448 : index
    %201 = vector.load %arg11[%c0_63, %c448_64] : memref<8x1024xbf16, #tpu.memory_space<vmem>>, vector<8x64xbf16>
    tpu.vector_store %arg11[%c0_63, %c448_64], %200 {strides = array<i32>} : memref<8x1024xbf16, #tpu.memory_space<vmem>>, vector<8x64xbf16>,
    %202 = arith.truncf %199 : vector<8x64xf32> to vector<8x64xbf16>
    %c0_65 = arith.constant 0 : index
    %c960 = arith.constant 960 : index
    %203 = vector.load %arg11[%c0_65, %c960] : memref<8x1024xbf16, #tpu.memory_space<vmem>>, vector<8x64xbf16>
    tpu.vector_store %arg11[%c0_65, %c960], %202 {strides = array<i32>} : memref<8x1024xbf16, #tpu.memory_space<vmem>>, vector<8x64xbf16>,
    %c0_66 = arith.constant 0 : index
    %c0_67 = arith.constant 0 : index
    %204 = vector.load %arg11[%c0_66, %c0_67] : memref<8x1024xbf16, #tpu.memory_space<vmem>>, vector<8x1024xbf16>
    %c0_68 = arith.constant 0 : index
    %c0_69 = arith.constant 0 : index
    %205 = vector.load %arg8[%c0_68, %c0_69] : memref<1024x128xbf16, #tpu.memory_space<vmem>>, vector<1024x128xbf16>
    %cst_70 = arith.constant dense<0.000000e+00> : vector<8x128xf32>
    %206 = tpu.matmul %204, %205, %cst_70 {dimension_numbers = #tpu.dot_dimension_numbers<[1], [0], [0], [1], [0, 0, 1, 1], [], []>} : vector<8x1024xbf16>, vector<1024x128xbf16>, vector<8x128xf32> -> vector<8x128xf32>
    %c0_71 = arith.constant 0 : index
    %c0_72 = arith.constant 0 : index
    %207 = vector.load %arg9[%c0_71, %c0_72] : memref<1x128xf32, #tpu.memory_space<vmem>>, vector<1x128xf32>
    %208 = vector.broadcast %207 : vector<1x128xf32> to vector<8x128xf32>
    %209 = arith.addf %206, %208 : vector<8x128xf32>
    %c0_73 = arith.constant 0 : index
    %c0_74 = arith.constant 0 : index
    %210 = vector.load %arg10[%c0_73, %c0_74] : memref<8x128xf32, #tpu.memory_space<vmem>>, vector<8x128xf32>
    tpu.vector_store %arg10[%c0_73, %c0_74], %209 {strides = array<i32>} : memref<8x128xf32, #tpu.memory_space<vmem>>, vector<8x128xf32>,
    return
  }
  func.func @transform_0(%arg0: i32) -> (i32, i32) {
    %c0_i32 = arith.constant 0 : i32
    %c0_i32_0 = arith.constant 0 : i32
    return %arg0, %c0_i32 : i32, i32
  }
  func.func @transform_1(%arg0: i32) -> (i32, i32) {
    %c0_i32 = arith.constant 0 : i32
    %c0_i32_0 = arith.constant 0 : i32
    %c0_i32_1 = arith.constant 0 : i32
    return %c0_i32, %c0_i32_0 : i32, i32
  }
  func.func @transform_2(%arg0: i32) -> (i32, i32) {
    %c0_i32 = arith.constant 0 : i32
    %c0_i32_0 = arith.constant 0 : i32
    %c0_i32_1 = arith.constant 0 : i32
    return %c0_i32, %c0_i32_0 : i32, i32
  }
  func.func @transform_3(%arg0: i32) -> (i32, i32) {
    %c0_i32 = arith.constant 0 : i32
    %c0_i32_0 = arith.constant 0 : i32
    %c0_i32_1 = arith.constant 0 : i32
    return %c0_i32, %c0_i32_0 : i32, i32
  }
  func.func @transform_4(%arg0: i32) -> (i32, i32) {
    %c0_i32 = arith.constant 0 : i32
    %c0_i32_0 = arith.constant 0 : i32
    %c0_i32_1 = arith.constant 0 : i32
    return %c0_i32, %c0_i32_0 : i32, i32
  }
  func.func @transform_5(%arg0: i32) -> (i32, i32) {
    %c0_i32 = arith.constant 0 : i32
    %c0_i32_0 = arith.constant 0 : i32
    %c0_i32_1 = arith.constant 0 : i32
    return %c0_i32, %c0_i32_0 : i32, i32
  }
  func.func @transform_6(%arg0: i32) -> (i32, i32) {
    %c0_i32 = arith.constant 0 : i32
    %c0_i32_0 = arith.constant 0 : i32
    %c0_i32_1 = arith.constant 0 : i32
    return %c0_i32, %c0_i32_0 : i32, i32
  }
  func.func @transform_7(%arg0: i32) -> (i32, i32) {
    %c0_i32 = arith.constant 0 : i32
    %c0_i32_0 = arith.constant 0 : i32
    %c0_i32_1 = arith.constant 0 : i32
    return %c0_i32, %c0_i32_0 : i32, i32
  }
  func.func @transform_8(%arg0: i32) -> (i32, i32) {
    %c0_i32 = arith.constant 0 : i32
    %c0_i32_0 = arith.constant 0 : i32
    %c0_i32_1 = arith.constant 0 : i32
    return %c0_i32, %c0_i32_0 : i32, i32
  }
  func.func @transform_9(%arg0: i32) -> (i32, i32) {
    %c0_i32 = arith.constant 0 : i32
    %c0_i32_0 = arith.constant 0 : i32
    return %arg0, %c0_i32 : i32, i32
  }
}

</mosaic_0001>

<bundles_post_ra>
// kernel: tpu_custom_call.1
= control target key start
LH: loop header
LB: loop body
LE: loop exit
PB: predicated region body
PF: predicated region fallthrough
CT: control target
= control target key end

     0   :  { %14 = vsyncpa [#allocation4], 0  ;;  %s3509_s0 = inlined_call_operand.hbm [shape: f32[16,32], index: 0, kind: input, shape index: {}]   ;;  %s3510_s1 = inlined_call_operand.vmem [shape: f32[1,32], index: 1, kind: input, shape index: {}]   ;;  %s3511_s2 = inlined_call_operand.vmem [shape: f32[1,32], index: 2, kind: input, shape index: {}]   ;;  %s3512_s3 = inlined_call_operand.hbm [shape: bf16[512,128], index: 3, kind: input, shape index: {}]   ;;  %s3513_s4 = inlined_call_operand.vmem [shape: f32[1,128], index: 4, kind: input, shape index: {}]   ;;  %s3514_s5 = inlined_call_operand.vmem [shape: f32[1,64], index: 5, kind: input, shape index: {}]   ;;  %s3515_s6 = inlined_call_operand.vmem [shape: f32[1,64], index: 6, kind: input, shape index: {}]   ;;  %s3516_s7 = inlined_call_operand.hbm [shape: bf16[1024,128], index: 7, kind: input, shape index: {}]   ;;  %s3517_s8 = inlined_call_operand.vmem [shape: f32[1,128], index: 8, kind: input, shape index: {}]   ;;  %s3518_s9 = inlined_call_operand.hbm [shape: f32[16,128], index: 9, kind: output, shape index: {}]  }
   0x1   :  { %16 = vsyncpa [#allocation4 + $0x1], 0 }
   0x2   :  { %17 = vsyncpa [#allocation7], 0 }
   0x3   :  { %18 = vsyncpa [#allocation5], 0 }
   0x4   :  { %20 = vsyncpa [#allocation5 + $0x1], 0  ;;  %s3048_s30 = smov 0   ;;  %s3050_s10 = smov 0  }
   0x5   :  { %s3052_s11 = smov 0   ;;  %s3054_s12 = smov 0  }
   0x6 LB: > { %s3069_s13 = sadd.s32 4294967295, %s2981_s12   ;;  %s2301_s14 = sadd.s32 4294967294, %s2981_s12   ;;  %s2981_s12 = sphi %s3054_s12, %s3541_s12   ;;  %s2977_s11 = sphi %s3052_s11, %s3540_s11   ;;  %s2973_s10 = sphi %s3050_s10, %s3539_s10   ;;  %s2969_s30 = sphi %s3048_s30, %s3538_s30  }
   0x7   : > { %p46_p0 = scmp.ne.s32.totalorder %s2973_s10, %s2969_s30  ;;  %p3519_p1 = scmp.eq.s32.totalorder %s3069_s13, 0 }
   0x8   : > { %p244_p3 = scmp.eq.s32.totalorder %s2301_s14, 1  ;;  %p2302_p5 = scmp.ge.s32.totalorder %s2981_s12, 1 }
   0x9   : > { %p3078_p4 = por %p3519_p1, %p46_p0  ;;  %p251_p7 = scmp.lt.s32.totalorder %s2981_s12, 3 }
   0xa   : > { %p3083_p6 = por %p244_p3, %p46_p0  ;;  %s2983_s18 = smov [#allocation6]  }
   0xb   : > { %s3523_s15 = scalar_select %p3078_p4, 1, 0 }
   0xc   : > { %s3524_s16 = scalar_select %p3083_p6, 1, 0 }
   0xd   : > { %p3088_p8 = pnand %p2302_p5, %p251_p7  ;;  %s269_s19 = sshll.u32 %s2983_s18, 4  ;;  %s3092_s19 = int_to_ptr.vmem [resolvable:$true] %s269_s19 }
   0xe   : > { %3525 = sst [smem:[#allocation13_spill]] %s3524_s16  ;;  %s2984_s21 = smov [#allocation8]  }
   0xf   : > { %p2639_p9 = pneg %p3088_p8  ;;  %s291_s22 = sshll.u32 %s2984_s21, 4  ;;  %s3103_s22 = int_to_ptr.vmem [resolvable:$true] %s291_s22 }
  0x10   : > { %s2825_s25 = scalar_lea.hbm %s3512_s3, 4096 }
  0x11   : > { %p3099_p11 = pnand %p2639_p9, %p3519_p1  ;;  %p2826_p12 = scmp.ne.s32.totalorder %s3512_s3, %s2825_s25 }
  0x12   : > { %p2832_p5 = scmp.lt.u32.totalorder %s2825_s25, %s3512_s3 }
  0x13   : > { %p2827_p13 = pneg %p3099_p11 }
  0x15   : > { %p2828_p0 = pnand %p2827_p13, %p2826_p12 }
  0x17   : > { %p2829_p3 = pneg %p2828_p0 }
  0x19   : > { %p2834_p7 = pnand %p2832_p5, %p2829_p3 }
  0x1b   : > { %2837 = shalt.err (!%p2834_p7)
}
  0x1c   : > { %s2838_s14 = scalar_lea.vmem %s3092_s19, 4096  ;;  %p2846_p2 = scmp.lt.s32.totalorder %s3092_s19, %s3092_s19 }
  0x1d   : > { %p2839_p9 = scmp.ne.s32.totalorder %s3092_s19, %s2838_s14  ;;  %p2847_p12 = scmp.lt.s32.totalorder %s2838_s14, %s2838_s14 }
  0x1f   : > { %p2841_p10 = pnand %p2839_p9, %p2827_p13  ;;  %p2848_p0 = por %p2847_p12, %p2846_p2 }
  0x21   : > { %p2842_p1 = pneg %p2841_p10 }
  0x23   : > { %p2849_p6 = pnand %p2848_p0, %p2842_p1 }
  0x25   : > { %2852 = shalt.err (!%p2849_p6)
}
  0x26   : > { %s2985_s18 = smov 64   ;;  %s2986_s21 = smov 4  }
  0x27   : > { %2642 = dma.hbm_to_vmem [thread:$0]  (!%p3099_p11), %s3512_s3, 4096, %s3092_s19, [#allocation7], %s2985_s18, %s2985_s18, %s2986_s21  }
  0x28   : > { %s2853_s27 = scalar_lea.hbm %s3516_s7, 8192 }
  0x29   : > { %p2854_p2 = scmp.ne.s32.totalorder %s3516_s7, %s2853_s27  ;;  %p2860_p10 = scmp.lt.u32.totalorder %s2853_s27, %s3516_s7 }
  0x2b   : > { %p2856_p1 = pnand %p2854_p2, %p2827_p13 }
  0x2d   : > { %p2857_p6 = pneg %p2856_p1 }
  0x2f   : > { %p2862_p3 = pnand %p2860_p10, %p2857_p6 }
  0x31   : > { %2865 = shalt.err (!%p2862_p3)
}
  0x32   : > { %s2866_s19 = scalar_lea.vmem %s3103_s22, 8192  ;;  %p2874_p12 = scmp.lt.s32.totalorder %s3103_s22, %s3103_s22 }
  0x33   : > { %p2867_p5 = scmp.ne.s32.totalorder %s3103_s22, %s2866_s19  ;;  %p2875_p0 = scmp.lt.s32.totalorder %s2866_s19, %s2866_s19 }
  0x35   : > { %p2869_p7 = pnand %p2867_p5, %p2827_p13  ;;  %p2876_p2 = por %p2875_p0, %p2874_p12 }
  0x37   : > { %p2870_p9 = pneg %p2869_p7 }
  0x39   : > { %p2877_p1 = pnand %p2876_p2, %p2870_p9 }
  0x3b   : > { %2880 = shalt.err (!%p2877_p1)
}
  0x3c   : > { %2645 = dma.hbm_to_vmem [thread:$0]  (!%p3099_p11), %s3516_s7, 8192, %s3103_s22, [#allocation7], %s2985_s18, %s2985_s18, %s2986_s21  }
  0x3d   : > { %s3158_s24 = sadd.s32 1, %s2981_s12   ;;  %s33_s20 = sadd.s32 1, %s2977_s11 }
  0x3e   : > { %s30_s25 = ssub.s32 %s2981_s12, %s3158_s24  ;;  %p40_p13 = scmp.ne.s32.totalorder %s2977_s11, %s2973_s10 }
  0x3f   : > { %p31_p6 = scmp.eq.s32.totalorder %s30_s25, 0  ;;  %p41_p10 = scmp.eq.s32.totalorder %s2981_s12, 0 }
  0x40   : > { %p3528_p3 = scmp.eq.s32.totalorder %s3069_s13, 1  ;;  %p2656_p7 = scmp.lt.s32.totalorder %s2981_s12, 2 }
  0x41   : > { %s3174_s27 = scalar_select %p31_p6, %s2977_s11, %s33_s20  }
  0x42   : > { %p3168_p5 = por %p3528_p3, %p40_p13  ;;  %p42_p9 = por %p41_p10, %p40_p13 }
  0x43   : > { %s308_s28 = sand.u32 1, %s2977_s11   ;;  %s2307_s22 = sshll.u32 %s2981_s12, 7 }
  0x44   : > { %s3529_s26 = scalar_select %p3168_p5, 1, 0 }
  0x45   : > { %s2306_s29 = sshll.u32 %s308_s28, 3  ;;  %s3181_s14 = scalar_lea.hbm %s3509_s0, %s2307_s22 }
  0x46   : > { %s312_s19 = scalar_lea.vmem [#allocation3], %s2306_s29  ;;  %p3185_p11 = pnand %p2656_p7, %p42_p9 }
  0x47   : > { %s319_s16 = sshll.u32 %s312_s19, 4  ;;  %s309_s20 = scalar_lea.sflag [#allocation4], %s308_s28  ;;  %s3183_s16 = int_to_ptr.vmem [resolvable:$true] %s319_s16 }
  0x48   : > { %s2881_s25 = scalar_lea.hbm %s3181_s14, 128  ;;  %p2883_p0 = pneg %p3185_p11 }
  0x49   : > { %p2882_p12 = scmp.ne.s32.totalorder %s3181_s14, %s2881_s25  ;;  %s2886_s18 = scalar_lea.hbm %s3509_s0, 256 }
  0x4a   : > { %p2887_p13 = scmp.lt.u32.totalorder %s3181_s14, %s3509_s0  ;;  %p2888_p6 = scmp.lt.u32.totalorder %s2886_s18, %s2881_s25 }
  0x4b   : > { %p2884_p2 = pnand %p2883_p0, %p2882_p12  ;;  %p2890_p3 = scmp.lt.u32.totalorder %s2881_s25, %s3181_s14 }
  0x4c   : > { %p2889_p10 = por %p2888_p6, %p2887_p13 }
  0x4d   : > { %p2885_p1 = pneg %p2884_p2 }
  0x4e   : > { %p2891_p7 = por %p2890_p3, %p2889_p10 }
  0x50   : > { %p2892_p9 = pnand %p2891_p7, %p2885_p1 }
  0x52   : > { %2895 = shalt.err (!%p2892_p9)
}
  0x53   : > { %s2896_s28 = scalar_lea.vmem %s3183_s16, 128  ;;  %s2987_s22 = smov [#allocation3]  }
  0x54   : > { %p2897_p12 = scmp.ne.s32.totalorder %s3183_s16, %s2896_s28  ;;  %s2901_s29 = sshll.u32 %s2987_s22, 4  ;;  %s2902_s29 = int_to_ptr.vmem [resolvable:$false] %s2901_s29 }
  0x55   : > { %s2903_s21 = scalar_lea.vmem %s2902_s29, 256  ;;  %p2904_p4 = scmp.lt.s32.totalorder %s3183_s16, %s2902_s29 }
  0x56   : > { %p2899_p2 = pnand %p2897_p12, %p2883_p0  ;;  %p2905_p13 = scmp.lt.s32.totalorder %s2903_s21, %s2896_s28 }
  0x58   : > { %p2900_p5 = pneg %p2899_p2  ;;  %p2906_p6 = por %p2905_p13, %p2904_p4 }
  0x5a   : > { %p2907_p10 = pnand %p2906_p6, %p2900_p5 }
  0x5c   : > { %2910 = shalt.err (!%p2907_p10)
}
  0x5d   : > { %2649 = dma.hbm_to_vmem [thread:$0]  (!%p3185_p11), %s3181_s14, 128, %s3183_s16, %s309_s20  }
  0x5e   : > { %328 = sbr.rel (%p3088_p8) target bundleno = 1694 (0x69e), region = 56  ;;  %s3217_s25 = sand.u32 (!%p3088_p8), 1, %s2973_s10  }
  0x5f   : > { %s2309_s18 = sshll.u32 (!%p3088_p8), %s3217_s25, 3  ;;  %s331_s19 = scalar_lea.sflag (!%p3088_p8), [#allocation4], %s3217_s25 }
  0x60   : > { %s334_s28 = scalar_lea.vmem (!%p3088_p8), [#allocation3], %s2309_s18  ;;  %p3531_p4 = scmp.ne.s32.totalorder (!%p3088_p8), %s3523_s15, 0 }
  0x65   : > { %2956 = dma.done.wait (%p3531_p4), %s331_s19, 128  }
  0x66   : > { %2958 = vsyncadd (%p3531_p4), %s331_s19, 4294967168  ;;  %p3532_p5 = scmp.eq.s32.totalorder %s3069_s13, 0 }
  0x68   : > { %2960 = dma.done.wait (%p3532_p5), [#allocation7], 12288   ;;  %p3533_p8 = pmov %p3532_p5 }
  0x69   : > { %vm381_vm0 = vcmask 261120   ;;  %v378_v0 = vld [vmem:[%s334_s28] sm:$0xff]  ;;  %v2988_v26 = vmov 683565275   ;;  %v2989_v28 = vmov 2475754826  }
  0x6a   : > { %2962 = vsyncadd (%p3533_p8), [#allocation7], 4294955008  ;;  %v382_v1 = vsel %vm381_vm0, %v378_v0, 0.0  ;;  %v2313_v11 = vld [vmem:[%s3510_s1] ss:$0 sm:$0xff]  ;;  %s2994_s23 = smov 32  }
  0x6b   : > { %383 = vadd.xlane.f32.xlu0 %v382_v1  ;;  %v2314_v13 = vld [vmem:[%s3511_s2] ss:$0 sm:$0xff]  ;;  %v2990_v31 = vmov 2131351028   ;;  %v2991_v34 = vmov 2102212464  }
  0x6c   : > { %v2992_v37 = vmov 920167782   ;;  %v2993_v40 = vmov 1326507024   ;;  %s2995_s20 = smov 64   ;;  %s2996_s22 = smov 96  }
  0x6d   : > { %s2199_s28 = scalar_lea.sflag [#allocation5], %s3217_s25  ;;  %p3534_p0 = scmp.ne.s32.totalorder %s3529_s26, 0 }
  0xf8   : > { %v384_v2 = vpop.xlane.xlu0 %383 }
  0xf9   : > { %v386_v3 = vmul.f32 0.03125, %v384_v2 }
  0xfb   : > { %v387_v4 = vsub.f32 %v378_v0, %v386_v3 }
  0xfd   : > { %v388_v5 = vmul.f32 %v387_v4, %v387_v4 }
  0xff   : > { %v389_v6 = vsel %vm381_vm0, %v388_v5, 0.0 }
 0x100   : > { %390 = vadd.xlane.f32.xlu0 %v389_v6 }
 0x18d   : > { %v391_v7 = vpop.xlane.xlu0 %390 }
 0x18e   : > { %v392_v8 = vmul.f32 0.03125, %v391_v7 }
 0x190   : > { %v393_v9 = vadd.f32 1e-05, %v392_v8 }
 0x192   : > { %2813 = vrsqrt.f32 %v393_v9 }
 0x19c   : > { %v2814_v10 = vpop.eup %2813 }
 0x19d   : > { %v395_v12 = vmul.f32 %v2814_v10, %v387_v4 }
 0x19f   : > { %v402_v14 = vmul.f32 %v2313_v11, %v395_v12 }
 0x1a1   : > { %v3237_v15 = vadd.f32 %v2314_v13, %v402_v14 }
 0x1a3   : > { %v413_v16 = vand.u32 2139095040, %v3237_v15  ;;  %v410_v20 = vand.u32 2147483647, %v3237_v15  ;;  %vm412_vm8 = vcmp.lt.s32.totalorder %v3237_v15, 0  ;;  %vm502_vm0 = vweird.f32 %v3237_v15 }
 0x1a5   : > { %v414_v17 = vshrl.u32 %v413_v16, 23  ;;  %v417_v23 = vand.u32 8388607, %v410_v20  ;;  %vm411_vm9 = vcmp.le.f32.partialorder %v410_v20, 0.7853982 }
 0x1a7   : > { %v2315_v18 = vadd.s32 4294967169, %v414_v17  ;;  %v418_v42 = vor.u32 8388608, %v417_v23 }
 0x1a9   : > { %v420_v19 = vadd.s32 1, %v2315_v18  ;;  %v458_v56 = vshll.u32 %v418_v42, 8 }
 0x1ab   : > { %vm421_vm1 = vcmp.gt.s32.totalorder %v420_v19, 0 }
 0x1ac   : > { %v422_v21 = vsel %vm421_vm1, %v420_v19, 0  ;;  %vm618_vm1 = vcmask 257024  }
 0x1ad   : > { %v424_v22 = vand.u32 31, %v422_v21  ;;  %v423_v25 = vshrl.u32 %v422_v21, 5 }
 0x1af   : > { %v425_v24 = vsub.s32 32, %v424_v22  ;;  %v427_v27 = vshll.u32 %v2988_v26, %v424_v22  ;;  %v430_v29 = vshll.u32 %v2989_v28, %v424_v22  ;;  %v433_v33 = vshll.u32 %v2990_v31, %v424_v22 }
 0x1b0   : > { %v436_v36 = vshll.u32 %v2991_v34, %v424_v22  ;;  %v439_v39 = vshll.u32 %v2992_v37, %v424_v22  ;;  %vm442_vm2 = vcmp.lt.s32.totalorder %v423_v25, 1  ;;  %vm445_vm3 = vcmp.lt.s32.totalorder %v423_v25, 4 }
 0x1b1   : > { %v428_v30 = vshrl.u32 %v2989_v28, %v425_v24  ;;  %v431_v32 = vshrl.u32 %v2990_v31, %v425_v24  ;;  %v434_v35 = vshrl.u32 %v2991_v34, %v425_v24  ;;  %v437_v38 = vshrl.u32 %v2992_v37, %v425_v24 }
 0x1b2   : > { %v440_v41 = vshrl.u32 %v2993_v40, %v425_v24  ;;  %v426_v51 = vshrl.u32 %v2988_v26, %v425_v24  ;;  %vm444_vm4 = vcmp.lt.s32.totalorder %v423_v25, 3  ;;  %vm443_vm5 = vcmp.lt.s32.totalorder %v423_v25, 2 }
 0x1b3   : > { %v429_v43 = vor.u32 %v428_v30, %v427_v27  ;;  %v432_v44 = vor.u32 %v431_v32, %v430_v29  ;;  %v435_v45 = vor.u32 %v434_v35, %v433_v33  ;;  %v438_v46 = vor.u32 %v437_v38, %v436_v36 }
 0x1b4   : > { %v441_v47 = vor.u32 %v440_v41, %v439_v39 }
 0x1b5   : > { %v447_v48 = vsel %vm445_vm3, %v435_v45, 2102212464  ;;  %v450_v49 = vsel %vm442_vm2, %v429_v43, %v432_v44  ;;  %v454_v50 = vsel %vm442_vm2, %v432_v44, %v435_v45  ;;  %v451_v52 = vsel %vm445_vm3, %v438_v46, 920167782 }
 0x1b6   : > { %v455_v53 = vsel %vm445_vm3, %v441_v47, 1326507024  ;;  %v452_v54 = vsel %vm444_vm4, %v435_v45, %v451_v52  ;;  %v446_v57 = vsel %vm442_vm2, %v426_v51, %v429_v43  ;;  %v448_v58 = vsel %vm444_vm4, %v432_v44, %v447_v48  ;;  %v2705_v51 = vld [vmem:[#allocation6 + $0x40] sm:$0xff]  }
 0x1b7   : > { %v456_v55 = vsel %vm444_vm4, %v438_v46, %v455_v53  ;;  %v453_v59 = vsel %vm443_vm5, %v450_v49, %v452_v54  ;;  %v449_v1 = vsel %vm443_vm5, %v446_v57, %v448_v58  ;;  %2487 = vmatprep.subr.bf16.mxu0 %v2705_v51  ;;  %vm634_vm2 = vcmask 519424  }
 0x1b8   : > { %v457_v60 = vsel %vm443_vm5, %v454_v50, %v456_v55  ;;  %v3257_v63 = vmul.u32.u64.low %v458_v56, %v453_v59  ;;  %v3258_v0 = vmul.u32.u64.high %v458_v56, %v453_v59, %v3257_v63  ;;  %v465_v3 = vmul.u32 %v458_v56, %v449_v1 }
 0x1b9   : > { %v3254_v61 = vmul.u32.u64.low %v458_v56, %v457_v60  ;;  %v3255_v62 = vmul.u32.u64.high %v458_v56, %v457_v60, %v3254_v61  ;;  %v2706_v60 = vld [vmem:[#allocation6] sm:$0xff]   ;;  %vm657_vm3 = vcmask 781824   ;;  %vm680_vm4 = vcmask 1044224  }
 0x1ba   : > { %v468_v2 = vadd.s32 1, %v3258_v0  ;;  %v2707_v61 = vld [vmem:[#allocation6 + $0x48] sm:$0xff]   ;;  %2488 = vmatpush3.bf16.msra.mxu0 %v2706_v60  ;;  %v2726_v60 = vld [vmem:[#allocation6 + $0xa0] sm:$0xff]   ;;  %vm1127_vm5 = vcmask 523264  }
 0x1bb   : > { %vm467_vm6 = vc.u32 %v3255_v62, %v3257_v63  ;;  %v466_v16 = vadd.s32 %v3257_v63, %v3255_v62  ;;  %v2708_v62 = vld [vmem:[#allocation6 + $0xc0] sm:$0xff]   ;;  %2489 = vmatprep.subr.bf16.mxu0 %v2707_v61 }
 0x1bc   : > { %v469_v4 = vsel %vm467_vm6, %v468_v2, %v3258_v0  ;;  %2509 = vmatprep.subr.bf16.mxu1 %v2708_v62 }
 0x1bd   : > { %v470_v5 = vadd.s32 %v469_v4, %v465_v3 }
 0x1bf   : > { %v471_v6 = vadd.s32 536870912, %v470_v5 }
 0x1c1   : > { %v472_v7 = vshrl.u32 %v471_v6, 30  ;;  %v2709_v6 = vld [vmem:[#allocation6 + $0x8] sm:$0xff]  }
 0x1c2   : > { %2490 = vmatpush3.bf16.msra.mxu0 %v2709_v6 }
 0x1c3   : > { %v473_v8 = vshll.u32 %v472_v7, 30  ;;  %v496_v32 = vsub.s32 4, %v472_v7 }
 0x1c5   : > { %v474_v9 = vsub.s32 %v470_v5, %v473_v8  ;;  %v497_v36 = vsel %vm412_vm8, %v496_v32, %v472_v7  ;;  %v2710_v7 = vld [vmem:[#allocation6 + $0x80] sm:$0xff]   ;;  %v2711_v8 = vld [vmem:[#allocation6 + $0x50] sm:$0xff]  }
 0x1c6   : > { %v499_v39 = vsel %vm411_vm9, 0, %v497_v36  ;;  %2510 = vmatpush3.bf16.msra.mxu1 %v2710_v7  ;;  %2491 = vmatprep.subr.bf16.mxu0 %v2711_v8  ;;  %v2718_v36 = vld [vmem:[#allocation6 + $0x90] sm:$0xff]   ;;  %v2730_v8 = vld [vmem:[#allocation6 + $0xa8] sm:$0xff]  }
 0x1c7   : > { %v476_v10 = vsub.s32 0, %v474_v9  ;;  %v606_v41 = vadd.s32 3, %v499_v39  ;;  %v503_v42 = vand.u32 3, %v499_v39  ;;  %v2729_v7 = vld [vmem:[#allocation6 + $0x30] sm:$0xff]  }
 0x1c9   : > { %v2316_v11 = vmin.u32 %v476_v10, %v474_v9  ;;  %v607_v43 = vand.u32 3, %v606_v41  ;;  %vm508_vm10 = vcmp.eq.s32.totalorder %v503_v42, 2  ;;  %vm505_vm12 = vcmp.eq.s32.totalorder %v503_v42, 0  ;;  %v2712_v10 = vld [vmem:[#allocation6 + $0xc8] sm:$0xff]  }
 0x1ca   : > { %vm504_vm14 = vcmp.lt.s32.totalorder %v503_v42, 2  ;;  %2511 = vmatprep.subr.bf16.mxu1 %v2712_v10  ;;  %v2719_v42 = vld [vmem:[#allocation6 + $0x60] sm:$0xff]  }
 0x1cb   : > { %v478_v12 = vclz %v2316_v11  ;;  %vm612_vm11 = vcmp.eq.s32.totalorder %v607_v43, 2  ;;  %vm609_vm13 = vcmp.eq.s32.totalorder %v607_v43, 0  ;;  %vm608_vm15 = vcmp.lt.s32.totalorder %v607_v43, 2  ;;  %v2720_v43 = vld [vmem:[#allocation6 + $0xd8] sm:$0xff]  }
 0x1cd   : > { %v2317_v13 = vadd.s32 4294967294, %v478_v12 }
 0x1cf   : > { %vm2318_vm7 = vcmp.lt.s32.totalorder %v2317_v13, 0 }
 0x1d0   : > { %v481_v14 = vsel %vm2318_vm7, 0, %v2317_v13 }
 0x1d1   : > { %v482_v17 = vsub.s32 32, %v481_v14  ;;  %v486_v18 = vsub.s32 4294967266, %v481_v14  ;;  %v483_v19 = vshll.u32 %v474_v9, %v481_v14 }
 0x1d3   : > { %v484_v21 = vshrl.u32 %v466_v16, %v482_v17  ;;  %v487_v22 = vadd.s32 127, %v486_v18 }
 0x1d5   : > { %v485_v23 = vor.u32 %v484_v21, %v483_v19  ;;  %v488_v24 = vshll.u32 %v487_v22, 23  ;;  %v2713_v19 = vld [vmem:[#allocation6 + $0x10] sm:$0xff]   ;;  %v2714_v21 = vld [vmem:[#allocation6 + $0x88] sm:$0xff]  }
 0x1d6   : > { %2492 = vmatpush3.bf16.msra.mxu0 %v2713_v19  ;;  %2512 = vmatpush3.bf16.msra.mxu1 %v2714_v21  ;;  %v2738_v21 = vld [vmem:[#allocation6 + $0xb8] sm:$0xff]  }
 0x1d7   : > { %v489_v25 = vor.u32 4788187, %v488_v24  ;;  %v492_v29 = vcvt.s32.f32 %v485_v23  ;;  %v2715_v24 = vld [vmem:[#allocation6 + $0x58] sm:$0xff]  }
 0x1d8   : > { %2493 = vmatprep.subr.bf16.mxu0 %v2715_v24 }
 0x1d9   : > { %v490_v27 = vand.u32 2147483647, %v489_v25  ;;  %v2716_v25 = vld [vmem:[#allocation6 + $0xd0] sm:$0xff]  }
 0x1da   : > { %2513 = vmatprep.subr.bf16.mxu1 %v2716_v25 }
 0x1db   : > { %v493_v30 = vmul.f32 %v492_v29, %v490_v27  ;;  %2514 = vmatpush3.bf16.msra.mxu1 %v2718_v36 }
 0x1dc   : > { %2515 = vmatprep.subr.bf16.mxu1 %v2720_v43 }
 0x1dd   : > { %v494_v33 = vxor.u32 2147483648, %v493_v30 }
 0x1df   : > { %v495_v35 = vsel %vm412_vm8, %v494_v33, %v493_v30 }
 0x1e0   : > { %v498_v38 = vsel %vm411_vm9, %v3237_v15, %v495_v35  ;;  %v2717_v35 = vld [vmem:[#allocation6 + $0x18] sm:$0xff]  }
 0x1e1   : > { %2815 = vcosq.f32 %v498_v38  ;;  %2494 = vmatpush3.bf16.msra.mxu0 %v2717_v35 }
 0x1e2   : > { %2817 = vsinq.f32 %v498_v38  ;;  %2495 = vmatprep.subr.bf16.mxu0 %v2719_v42 }
 0x1eb   : > { %v2816_v44 = vpop.eup %2815 }
 0x1ec   : > { %v2818_v45 = vpop.eup %2817  ;;  %v509_v46 = vxor.u32 2147483648, %v2816_v44 }
 0x1ed   : > { %v506_v47 = vxor.u32 2147483648, %v2818_v45 }
 0x1ee   : > { %v510_v48 = vsel %vm508_vm10, %v509_v46, %v2818_v45  ;;  %v614_v20 = vsel %vm612_vm11, %v509_v46, %v2818_v45 }
 0x1ef   : > { %v507_v49 = vsel %vm505_vm12, %v2816_v44, %v506_v47  ;;  %v611_v50 = vsel %vm609_vm13, %v2816_v44, %v506_v47 }
 0x1f0   : > { %v511_v52 = vsel %vm504_vm14, %v507_v49, %v510_v48  ;;  %v615_v53 = vsel %vm608_vm15, %v611_v50, %v614_v20  ;;  %v2721_v49 = vld [vmem:[#allocation6 + $0x20] sm:$0xff]   ;;  %v2722_v50 = vld [vmem:[#allocation6 + $0x98] sm:$0xff]  }
 0x1f1   : > { %v3269_v54 = vsel %vm502_vm0, nan, %v511_v52  ;;  %v3271_v55 = vsel %vm502_vm0, nan, %v615_v53  ;;  %2496 = vmatpush3.bf16.msra.mxu0 %v2721_v49  ;;  %2516 = vmatpush3.bf16.msra.mxu1 %v2722_v50  ;;  %v2723_v53 = vld [vmem:[#allocation6 + $0x68] sm:$0xff]   ;;  %v2335_v50 = vld [vmem:[%s3513_s4] ss:$0 sm:$0xff] }
 0x1f2   : > { %v622_v56 = vmul.f32 %v3269_v54, %v3269_v54  ;;  %v623_v57 = vmul.f32 %v3271_v55, %v3271_v55  ;;  %v625_v58 = vmul.f32 %v3271_v55, %v3269_v54  ;;  %v617_v15 = vpack.c.bf16 %v3269_v54, %v3269_v54  ;;  %2497 = vmatprep.subr.bf16.mxu0 %v2723_v53 }
 0x1f3   : > { %v620_v59 = vpack.c.bf16 %v3271_v55, %v3271_v55 }
 0x1f4   : > { %v624_v63 = vsub.f32 %v622_v56, %v623_v57  ;;  %v626_v0 = vadd.f32 %v625_v58, %v625_v58  ;;  %619 = vst.msk [vmem:[#allocation2] sm:$0xf] %vm618_vm1, %v617_v15  ;;  %v2724_v56 = vld [vmem:[#allocation6 + $0xe0] sm:$0xff]  }
 0x1f5   : > { %621 = vst.msk [vmem:[#allocation2 + $0x8] sm:$0xf] %vm618_vm1, %v620_v59  ;;  %v2725_v59 = vld [vmem:[#allocation6 + $0x28] sm:$0xff]   ;;  %2517 = vmatprep.subr.bf16.mxu1 %v2724_v56 }
 0x1f6   : > { %v2467_v1 = vpack.c.bf16 %v624_v63, %v624_v63  ;;  %v644_v2 = vmul.f32 %v624_v63, %v3269_v54  ;;  %v645_v3 = vmul.f32 %v626_v0, %v3271_v55  ;;  %v647_v4 = vmul.f32 %v626_v0, %v3269_v54  ;;  %2498 = vmatpush3.bf16.msra.mxu0 %v2725_v59 }
 0x1f7   : > { %v648_v5 = vmul.f32 %v624_v63, %v3271_v55  ;;  %v2468_v11 = vpack.c.bf16 %v626_v0, %v626_v0  ;;  %v2727_v63 = vld [vmem:[#allocation6 + $0x70] sm:$0xff]   ;;  %v2728_v0 = vld [vmem:[#allocation6 + $0xe8] sm:$0xff]   ;;  %2518 = vmatpush3.bf16.msra.mxu1 %v2726_v60 }
 0x1f8   : > { %631 = vrot.lane.b32.xlu1 %v2467_v1, %s2994_s23  ;;  %v646_v9 = vsub.f32 %v644_v2, %v645_v3  ;;  %2499 = vmatprep.subr.bf16.mxu0 %v2727_v63 }
 0x1f9   : > { %v649_v12 = vadd.f32 %v648_v5, %v647_v4  ;;  %2519 = vmatprep.subr.bf16.mxu1 %v2728_v0 }
 0x1fa   : > { %v2469_v13 = vpack.c.bf16 %v646_v9, %v646_v9  ;;  %v671_v14 = vmul.f32 %v646_v9, %v3271_v55  ;;  %v667_v16 = vmul.f32 %v646_v9, %v3269_v54  ;;  %2500 = vmatpush3.bf16.msra.mxu0 %v2729_v7  ;;  %v2373_v7 = vld [vmem:[%s3515_s6] ss:$0 sm:$0xff] }
 0x1fb   : > { %v670_v17 = vmul.f32 %v649_v12, %v3269_v54  ;;  %v668_v18 = vmul.f32 %v649_v12, %v3271_v55  ;;  %v2470_v27 = vpack.c.bf16 %v649_v12, %v649_v12  ;;  %v2732_v12 = vld [vmem:[#allocation6 + $0xf0] sm:$0xff]   ;;  %2520 = vmatpush3.bf16.msra.mxu1 %v2730_v8 }
 0x1fc   : > { %654 = vrot.lane.b32.xlu0 %v2469_v13, %s2995_s20  ;;  %640 = vrot.lane.b32.xlu1 %v2468_v11, %s2994_s23  ;;  %v2731_v11 = vld [vmem:[#allocation6 + $0x78] sm:$0xff]  }
 0x1fd   : > { %v3296_v22 = vadd.f32 %v671_v14, %v670_v17  ;;  %v669_v23 = vsub.f32 %v667_v16, %v668_v18  ;;  %v2733_v14 = vld [vmem:[#allocation6 + $0x38] sm:$0xff]   ;;  %2501 = vmatprep.subr.bf16.mxu0 %v2731_v11  ;;  %2521 = vmatprep.subr.bf16.mxu1 %v2732_v12  ;;  %v2734_v18 = vld [vmem:[#allocation6 + $0xb0] sm:$0xff]   ;;  %v2743_v11 = vld [vmem:[#allocation8 + $0x48] sm:$0xff]  }
 0x1fe   : > { %2502 = vmatpush3.bf16.msra.mxu0 %v2733_v14  ;;  %v2744_v14 = vld [vmem:[#allocation8 + $0x8] sm:$0xff]  }
 0x1ff   : > { %v690_v29 = vmul.f32 %v669_v23, %v3269_v54  ;;  %v694_v30 = vmul.f32 %v669_v23, %v3271_v55  ;;  %v691_v32 = vmul.f32 %v3296_v22, %v3271_v55  ;;  %v693_v33 = vmul.f32 %v3296_v22, %v3269_v54  ;;  %2522 = vmatpush3.bf16.msra.mxu1 %v2734_v18 }
 0x200   : > { %663 = vrot.lane.b32.xlu1 %v2470_v27, %s2995_s20  ;;  %v2471_v39 = vpack.c.bf16 %v669_v23, %v669_v23  ;;  %v2472_v23 = vpack.c.bf16 %v3296_v22, %v3296_v22 }
 0x201   : > { %v692_v38 = vsub.f32 %v690_v29, %v691_v32  ;;  %v695_v41 = vadd.f32 %v694_v30, %v693_v33 }
 0x203   : > { %v700_v44 = vmul.f32 %v692_v38, %v3269_v54  ;;  %v704_v45 = vmul.f32 %v692_v38, %v3271_v55  ;;  %v696_v46 = vpack.c.bf16 %v692_v38, %v692_v38  ;;  %v701_v47 = vmul.f32 %v695_v41, %v3271_v55 }
 0x204   : > { %677 = vrot.lane.b32.xlu1 %v2471_v39, %s2996_s22  ;;  %v703_v48 = vmul.f32 %v695_v41, %v3269_v54  ;;  %v698_v20 = vpack.c.bf16 %v695_v41, %v695_v41 }
 0x205   : > { %697 = vst.msk [vmem:[#allocation2 + $0x4] sm:$0xf] %vm618_vm1, %v696_v46  ;;  %v702_v51 = vsub.f32 %v700_v44, %v701_v47 }
 0x206   : > { %v705_v52 = vadd.f32 %v704_v45, %v703_v48  ;;  %699 = vst.msk [vmem:[#allocation2 + $0xc] sm:$0xf] %vm618_vm1, %v698_v20 }
 0x207   : > { %v2473_v57 = vpack.c.bf16 %v702_v51, %v702_v51  ;;  %v726_v15 = vmul.f32 %v702_v51, %v3271_v55  ;;  %v722_v61 = vmul.f32 %v702_v51, %v3269_v54 }
 0x208   : > { %v725_v58 = vmul.f32 %v705_v52, %v3269_v54  ;;  %v723_v62 = vmul.f32 %v705_v52, %v3271_v55  ;;  %v2474_v4 = vpack.c.bf16 %v705_v52, %v705_v52 }
 0x209   : > { %710 = vrot.lane.b32.xlu1 %v2473_v57, %s2994_s23 }
 0x20a   : > { %v727_v1 = vadd.f32 %v726_v15, %v725_v58  ;;  %v724_v2 = vsub.f32 %v722_v61, %v723_v62 }
 0x20c   : > { %v2476_v3 = vpack.c.bf16 %v727_v1, %v727_v1  ;;  %v747_v5 = vmul.f32 %v727_v1, %v3269_v54  ;;  %v745_v6 = vmul.f32 %v727_v1, %v3271_v55  ;;  %v748_v9 = vmul.f32 %v724_v2, %v3271_v55 }
 0x20d   : > { %v744_v10 = vmul.f32 %v724_v2, %v3269_v54  ;;  %718 = vrot.lane.b32.xlu1 %v2474_v4, %s2994_s23  ;;  %v2475_v16 = vpack.c.bf16 %v724_v2, %v724_v2  ;;  %v2737_v54 = vld [vmem:[#allocation6 + $0xf8] sm:$0xff]   ;;  %s2464_s23 = sshll.u32 %s3069_s13, 7 }
 0x20e   : > { %740 = vrot.lane.b32.xlu0 %v2476_v3, %s2995_s20  ;;  %v749_v13 = vadd.f32 %v748_v9, %v747_v5  ;;  %2523 = vmatprep.subr.bf16.mxu1 %v2737_v54  ;;  %v2741_v9 = vld [vmem:[#allocation8 + $0x40] sm:$0xff]   ;;  %v2747_v54 = vld [vmem:[#allocation8 + $0x58] sm:$0xff]   ;;  %s3465_s19 = scalar_lea.hbm %s3518_s9, %s2464_s23 }
 0x20f   : > { %v746_v17 = vsub.f32 %v744_v10, %v745_v6  ;;  %2524 = vmatpush3.bf16.msra.mxu1 %v2738_v21  ;;  %v2372_v6 = vld [vmem:[%s3514_s5] ss:$0 sm:$0xff]  ;;  %v2742_v10 = vld [vmem:[#allocation8] sm:$0xff]   ;;  %2531 = vmatprep.subr.bf16.mxu0 %v2741_v9 }
 0x210   : > { %v2478_v19 = vpack.c.bf16 %v749_v13, %v749_v13 }
 0x211   : > { %732 = vrot.lane.b32.xlu1 %v2475_v16, %s2995_s20  ;;  %v2477_v55 = vpack.c.bf16 %v746_v17, %v746_v17  ;;  %v2745_v16 = vld [vmem:[#allocation8 + $0x50] sm:$0xff]  }
 0x212   : > { %762 = vrot.lane.b32.xlu0 %v2478_v19, %s2996_s22  ;;  %v2746_v19 = vld [vmem:[#allocation8 + $0x10] sm:$0xff]  }
 0x215   : > { %754 = vrot.lane.b32.xlu1 %v2477_v55, %s2996_s22 }
 0x219   : > { %686 = vrot.lane.b32.xlu1 %v2472_v23, %s2996_s22  ;;  %v2748_v23 = vld [vmem:[#allocation8 + $0x18] sm:$0xff]  }
 0x26a   : > { %v632_v24 = vpop.permute.xlu1 %631 }
 0x26b   : > { %635 = vst.msk [vmem:[#allocation2] sm:$0xf] %vm634_vm2, %v632_v24 }
 0x26e   : > { %v655_v25 = vpop.permute.xlu0 %654  ;;  %v641_v27 = vpop.permute.xlu1 %640 }
 0x26f   : > { %658 = vst.msk [vmem:[#allocation2] sm:$0xf] %vm657_vm3, %v655_v25 }
 0x270   : > { %643 = vst.msk [vmem:[#allocation2 + $0x8] sm:$0xf] %vm634_vm2, %v641_v27 }
 0x272   : > { %v664_v29 = vpop.permute.xlu1 %663 }
 0x273   : > { %666 = vst.msk [vmem:[#allocation2 + $0x8] sm:$0xf] %vm657_vm3, %v664_v29 }
 0x276   : > { %v678_v30 = vpop.permute.xlu1 %677 }
 0x277   : > { %681 = vst.msk [vmem:[#allocation2] sm:$0xf] %vm680_vm4, %v678_v30 }
 0x27b   : > { %v711_v22 = vpop.permute.xlu1 %710 }
 0x27c   : > { %713 = vst.msk [vmem:[#allocation2 + $0x4] sm:$0xf] %vm634_vm2, %v711_v22 }
 0x27f   : > { %v719_v33 = vpop.permute.xlu1 %718 }
 0x280   : > { %v741_v32 = vpop.permute.xlu0 %740  ;;  %721 = vst.msk [vmem:[#allocation2 + $0xc] sm:$0xf] %vm634_vm2, %v719_v33 }
 0x281   : > { %743 = vst.msk [vmem:[#allocation2 + $0xc] sm:$0xf] %vm657_vm3, %v741_v32 }
 0x283   : > { %v733_v35 = vpop.permute.xlu1 %732 }
 0x284   : > { %v763_v36 = vpop.permute.xlu0 %762  ;;  %735 = vst.msk [vmem:[#allocation2 + $0x4] sm:$0xf] %vm657_vm3, %v733_v35 }
 0x285   : > { %765 = vst.msk [vmem:[#allocation2 + $0xc] sm:$0xf] %vm680_vm4, %v763_v36 }
 0x287   : > { %v755_v38 = vpop.permute.xlu1 %754 }
 0x288   : > { %757 = vst.msk [vmem:[#allocation2 + $0x4] sm:$0xf] %vm680_vm4, %v755_v38 }
 0x28b   : > { %v687_v39 = vpop.permute.xlu1 %686 }
 0x28c   : > { %689 = vst.msk [vmem:[#allocation2 + $0x8] sm:$0xf] %vm680_vm4, %v687_v39 }
 0x28f   : > { %v766_v41 = vld [vmem:[#allocation2] sm:$0xff] }
 0x290   : > { %v2337_v42 = vcombine.high %v766_v41, %v766_v41  ;;  %v2336_v43 = vcombine.low %v766_v41, %v766_v41 }
 0x292   : > { %1077 = vmatprep.mubr.bf16.mxu0 %v2337_v42 }
 0x293   : > { %1078 = vmatmul.mubr.bf16.vlgmr.msra.gmra.mrb[0].mxu0 %v2336_v43  ;;  %v767_v44 = vld [vmem:[#allocation2 + $0x8] sm:$0xff] }
 0x294   : > { %v2339_v45 = vcombine.high %v767_v44, %v767_v44  ;;  %v2338_v46 = vcombine.low %v767_v44, %v767_v44  ;;  %2532 = vmatpush3.bf16.msra.mxu0 %v2742_v10 }
 0x295   : > { %2533 = vmatprep.subr.bf16.mxu0 %v2743_v11 }
 0x296   : > { %1117 = vmatprep.mubr.bf16.mxu1 %v2339_v45 }
 0x297   : > { %1118 = vmatmul.mubr.bf16.vlgmr.msra.gmra.mrb[0].mxu1 %v2338_v46 }
 0x298   : > { %2534 = vmatpush3.bf16.msra.mxu0 %v2744_v14 }
 0x299   : > { %2535 = vmatprep.subr.bf16.mxu0 %v2745_v16 }
 0x29c   : > { %2536 = vmatpush3.bf16.msra.mxu0 %v2746_v19 }
 0x29d   : > { %2537 = vmatprep.subr.bf16.mxu0 %v2747_v54 }
 0x2a0   : > { %2538 = vmatpush3.bf16.msra.mxu0 %v2748_v23 }
 0x366   : > { %v2503_v47 = vpop.f32.mrb[0].mxu0 }
 0x367   : > { %v2504_v48 = vpop.f32.mrb[1].mxu0 }
 0x368   : > { %v2505_v20 = vadd.f32 %v2504_v48, %v2503_v47  ;;  %v2506_v49 = vpop.f32.mrb[2].mxu0 }
 0x369   : > { %v2507_v51 = vpop.f32.mrb[3].mxu0 }
 0x36a   : > { %v2525_v52 = vpop.f32.mrb[0].mxu1  ;;  %v1080_v56 = vadd.f32 %v2505_v20, %v2335_v50 }
 0x36b   : > { %v2526_v53 = vpop.f32.mrb[1].mxu1 }
 0x36c   : > { %v2527_v57 = vadd.f32 %v2526_v53, %v2525_v52  ;;  %v2528_v58 = vpop.f32.mrb[2].mxu1 }
 0x36d   : > { %v2529_v15 = vpop.f32.mrb[3].mxu1 }
 0x36e   : > { %v1120_v59 = vadd.f32 %v2527_v57, %v1080_v56 }
 0x370   : > { %v1128_v60 = vsel %vm1127_vm5, %v1120_v59, 0.0 }
 0x371   : > { %1129 = vadd.xlane.f32.xlu1 %v1128_v60 }
 0x3fe   : > { %v1130_v61 = vpop.xlane.xlu1 %1129 }
 0x3ff   : > { %v1132_v62 = vmul.f32 0.015625, %v1130_v61 }
 0x401   : > { %v1133_v63 = vsub.f32 %v1120_v59, %v1132_v62 }
 0x403   : > { %v1134_v0 = vmul.f32 %v1133_v63, %v1133_v63 }
 0x405   : > { %v1135_v1 = vsel %vm1127_vm5, %v1134_v0, 0.0 }
 0x406   : > { %1136 = vadd.xlane.f32.xlu0 %v1135_v1 }
 0x493   : > { %v1137_v2 = vpop.xlane.xlu0 %1136 }
 0x494   : > { %v1138_v3 = vmul.f32 0.015625, %v1137_v2 }
 0x496   : > { %v1139_v4 = vadd.f32 1e-05, %v1138_v3 }
 0x498   : > { %2819 = vrsqrt.f32 %v1139_v4 }
 0x4a2   : > { %v2820_v5 = vpop.eup %2819 }
 0x4a3   : > { %v1141_v8 = vmul.f32 %v2820_v5, %v1133_v63 }
 0x4a5   : > { %v1148_v12 = vmul.f32 %v2372_v6, %v1141_v8 }
 0x4a7   : > { %v3350_v13 = vadd.f32 %v2373_v7, %v1148_v12 }
 0x4a9   : > { %v1159_v17 = vand.u32 2139095040, %v3350_v13  ;;  %v1156_v24 = vand.u32 2147483647, %v3350_v13  ;;  %vm1158_vm13 = vcmp.lt.s32.totalorder %v3350_v13, 0  ;;  %vm1248_vm5 = vweird.f32 %v3350_v13 }
 0x4ab   : > { %v1160_v18 = vshrl.u32 %v1159_v17, 23  ;;  %v1163_v29 = vand.u32 8388607, %v1156_v24  ;;  %vm1157_vm14 = vcmp.le.f32.partialorder %v1156_v24, 0.7853982 }
 0x4ad   : > { %v2374_v55 = vadd.s32 4294967169, %v1160_v18  ;;  %v1164_v45 = vor.u32 8388608, %v1163_v29 }
 0x4af   : > { %v1166_v21 = vadd.s32 1, %v2374_v55 }
 0x4b1   : > { %vm1167_vm6 = vcmp.gt.s32.totalorder %v1166_v21, 0 }
 0x4b2   : > { %v1168_v25 = vsel %vm1167_vm6, %v1166_v21, 0  ;;  %vm1364_vm6 = vcmask 519168  }
 0x4b3   : > { %v1170_v27 = vand.u32 31, %v1168_v25  ;;  %v1169_v22 = vshrl.u32 %v1168_v25, 5 }
 0x4b5   : > { %v1171_v30 = vsub.s32 32, %v1170_v27  ;;  %v1173_v32 = vshll.u32 %v2988_v26, %v1170_v27  ;;  %v1176_v33 = vshll.u32 %v2989_v28, %v1170_v27  ;;  %v1179_v38 = vshll.u32 %v2990_v31, %v1170_v27 }
 0x4b6   : > { %v1182_v41 = vshll.u32 %v2991_v34, %v1170_v27  ;;  %v1185_v43 = vshll.u32 %v2992_v37, %v1170_v27  ;;  %vm1188_vm7 = vcmp.lt.s32.totalorder %v1169_v22, 1  ;;  %vm1191_vm8 = vcmp.lt.s32.totalorder %v1169_v22, 4 }
 0x4b7   : > { %v1174_v35 = vshrl.u32 %v2989_v28, %v1171_v30  ;;  %v1177_v36 = vshrl.u32 %v2990_v31, %v1171_v30  ;;  %v1180_v39 = vshrl.u32 %v2991_v34, %v1171_v30  ;;  %v1183_v42 = vshrl.u32 %v2992_v37, %v1171_v30 }
 0x4b8   : > { %v1186_v44 = vshrl.u32 %v2993_v40, %v1171_v30  ;;  %v1172_v51 = vshrl.u32 %v2988_v26, %v1171_v30  ;;  %vm1190_vm9 = vcmp.lt.s32.totalorder %v1169_v22, 3  ;;  %vm1189_vm10 = vcmp.lt.s32.totalorder %v1169_v22, 2 }
 0x4b9   : > { %v1175_v46 = vor.u32 %v1174_v35, %v1173_v32  ;;  %v1178_v47 = vor.u32 %v1177_v36, %v1176_v33  ;;  %v1181_v48 = vor.u32 %v1180_v39, %v1179_v38  ;;  %v1184_v20 = vor.u32 %v1183_v42, %v1182_v41  ;;  %v2749_v42 = vld [vmem:[#allocation8 + $0x60] sm:$0xff]  }
 0x4ba   : > { %v1187_v28 = vor.u32 %v1186_v44, %v1185_v43  ;;  %v1204_v40 = vshll.u32 %v1164_v45, 8  ;;  %v2750_v43 = vld [vmem:[#allocation8 + $0xc0] sm:$0xff]   ;;  %2539 = vmatprep.subr.bf16.mxu0 %v2749_v42 }
 0x4bb   : > { %v1193_v49 = vsel %vm1191_vm8, %v1181_v48, 2102212464  ;;  %v1196_v31 = vsel %vm1188_vm7, %v1175_v46, %v1178_v47  ;;  %v1200_v50 = vsel %vm1188_vm7, %v1178_v47, %v1181_v48  ;;  %v1197_v34 = vsel %vm1191_vm8, %v1184_v20, 920167782  ;;  %v2751_v44 = vld [vmem:[#allocation8 + $0x20] sm:$0xff]   ;;  %2553 = vmatprep.subr.bf16.mxu1 %v2750_v43 }
 0x4bc   : > { %v1201_v52 = vsel %vm1191_vm8, %v1187_v28, 1326507024  ;;  %v1198_v37 = vsel %vm1190_vm9, %v1181_v48, %v1197_v34  ;;  %v1192_v56 = vsel %vm1188_vm7, %v1172_v51, %v1175_v46  ;;  %v1194_v57 = vsel %vm1190_vm9, %v1178_v47, %v1193_v49  ;;  %v2752_v47 = vld [vmem:[#allocation8 + $0x80] sm:$0xff]   ;;  %v2753_v48 = vld [vmem:[#allocation8 + $0x68] sm:$0xff]   ;;  %2540 = vmatpush3.bf16.msra.mxu0 %v2751_v44 }
 0x4bd   : > { %v1202_v53 = vsel %vm1190_vm9, %v1184_v20, %v1201_v52  ;;  %v1199_v58 = vsel %vm1189_vm10, %v1196_v31, %v1198_v37  ;;  %v1195_v63 = vsel %vm1189_vm10, %v1192_v56, %v1194_v57  ;;  %v2754_v20 = vld [vmem:[#allocation8 + $0xc8] sm:$0xff]   ;;  %2554 = vmatpush3.bf16.msra.mxu1 %v2752_v47  ;;  %2541 = vmatprep.subr.bf16.mxu0 %v2753_v48  ;;  %v2775_v47 = vld [vmem:[#allocation8 + $0xf0] sm:$0xff]   ;;  %vm1380_vm7 = vcmask 1043968  }
 0x4be   : > { %v1203_v15 = vsel %vm1189_vm10, %v1200_v50, %v1202_v53  ;;  %v3370_v61 = vmul.u32.u64.low %v1204_v40, %v1199_v58  ;;  %v3371_v62 = vmul.u32.u64.high %v1204_v40, %v1199_v58, %v3370_v61  ;;  %v1211_v0 = vmul.u32 %v1204_v40, %v1195_v63  ;;  %v2755_v31 = vld [vmem:[#allocation8 + $0x28] sm:$0xff]   ;;  %2555 = vmatprep.subr.bf16.mxu1 %v2754_v20  ;;  %v2759_v63 = vld [vmem:[#allocation8 + $0x30] sm:$0xff]  }
 0x4bf   : > { %v3367_v59 = vmul.u32.u64.low %v1204_v40, %v1203_v15  ;;  %v3368_v60 = vmul.u32.u64.high %v1204_v40, %v1203_v15, %v3367_v59  ;;  %v2756_v34 = vld [vmem:[#allocation8 + $0x88] sm:$0xff]   ;;  %v2777_v48 = vld [vmem:[#allocation8 + $0xb0] sm:$0xff]  }
 0x4c0   : > { %v1214_v26 = vadd.s32 1, %v3371_v62  ;;  %2542 = vmatpush3.bf16.msra.mxu0 %v2755_v31 }
 0x4c1   : > { %vm1213_vm11 = vc.u32 %v3368_v60, %v3370_v61  ;;  %v1212_v12 = vadd.s32 %v3370_v61, %v3368_v60  ;;  %2556 = vmatpush3.bf16.msra.mxu1 %v2756_v34  ;;  %v2757_v61 = vld [vmem:[#allocation8 + $0x70] sm:$0xff]   ;;  %v2781_v34 = vld [vmem:[#allocation8 + $0xb8] sm:$0xff]  }
 0x4c2   : > { %v1215_v1 = vsel %vm1213_vm11, %v1214_v26, %v3371_v62  ;;  %v2758_v62 = vld [vmem:[#allocation8 + $0xd0] sm:$0xff]   ;;  %2543 = vmatprep.subr.bf16.mxu0 %v2757_v61 }
 0x4c3   : > { %v1216_v2 = vadd.s32 %v1215_v1, %v1211_v0  ;;  %v2760_v26 = vld [vmem:[#allocation8 + $0x90] sm:$0xff]   ;;  %v2761_v0 = vld [vmem:[#allocation8 + $0x78] sm:$0xff]   ;;  %2557 = vmatprep.subr.bf16.mxu1 %v2758_v62 }
 0x4c4   : > { %v2762_v1 = vld [vmem:[#allocation8 + $0xd8] sm:$0xff]   ;;  %2544 = vmatpush3.bf16.msra.mxu0 %v2759_v63 }
 0x4c5   : > { %v1217_v3 = vadd.s32 536870912, %v1216_v2  ;;  %2558 = vmatpush3.bf16.msra.mxu1 %v2760_v26  ;;  %2545 = vmatprep.subr.bf16.mxu0 %v2761_v0 }
 0x4c6   : > { %2559 = vmatprep.subr.bf16.mxu1 %v2762_v1 }
 0x4c7   : > { %v1218_v4 = vshrl.u32 %v1217_v3, 30 }
 0x4c9   : > { %v1219_v5 = vshll.u32 %v1218_v4, 30  ;;  %v1242_v29 = vsub.s32 4, %v1218_v4 }
 0x4cb   : > { %v1220_v6 = vsub.s32 %v1216_v2, %v1219_v5  ;;  %v1243_v32 = vsel %vm1158_vm13, %v1242_v29, %v1218_v4 }
 0x4cc   : > { %v1245_v35 = vsel %vm1157_vm14, 0, %v1243_v32 }
 0x4cd   : > { %v1222_v7 = vsub.s32 0, %v1220_v6  ;;  %v1352_v36 = vadd.s32 3, %v1245_v35  ;;  %v1249_v38 = vand.u32 3, %v1245_v35  ;;  %v2773_v35 = vld [vmem:[#allocation8 + $0xa8] sm:$0xff]  }
 0x4cf   : > { %v2375_v8 = vmin.u32 %v1222_v7, %v1220_v6  ;;  %v1353_v39 = vand.u32 3, %v1352_v36  ;;  %vm1254_vm15 = vcmp.eq.s32.totalorder %v1249_v38, 2  ;;  %vm1251_vm1 = vcmp.eq.s32.totalorder %v1249_v38, 0  ;;  %v2763_v7 = vld [vmem:[#allocation8 + $0x38] sm:$0xff]  }
 0x4d0   : > { %vm1250_vm3 = vcmp.lt.s32.totalorder %v1249_v38, 2  ;;  %2546 = vmatpush3.bf16.msra.mxu0 %v2763_v7  ;;  %v2772_v7 = vld [vmem:[#allocation8 + $0x148] sm:$0xff]  }
 0x4d1   : > { %v1224_v9 = vclz %v2375_v8  ;;  %vm1358_vm0 = vcmp.eq.s32.totalorder %v1353_v39, 2  ;;  %vm1355_vm2 = vcmp.eq.s32.totalorder %v1353_v39, 0  ;;  %vm1354_vm4 = vcmp.lt.s32.totalorder %v1353_v39, 2 }
 0x4d3   : > { %v2376_v10 = vadd.s32 4294967294, %v1224_v9  ;;  %v2764_v9 = vld [vmem:[#allocation8 + $0x98] sm:$0xff]  }
 0x4d4   : > { %2560 = vmatpush3.bf16.msra.mxu1 %v2764_v9  ;;  %v2774_v9 = vld [vmem:[#allocation8 + $0x108] sm:$0xff]  }
 0x4d5   : > { %vm2377_vm12 = vcmp.lt.s32.totalorder %v2376_v10, 0 }
 0x4d6   : > { %v1227_v11 = vsel %vm2377_vm12, 0, %v2376_v10 }
 0x4d7   : > { %v1228_v14 = vsub.s32 32, %v1227_v11  ;;  %v1232_v16 = vsub.s32 4294967266, %v1227_v11  ;;  %v1229_v17 = vshll.u32 %v1220_v6, %v1227_v11 }
 0x4d9   : > { %v1230_v18 = vshrl.u32 %v1212_v12, %v1228_v14  ;;  %v1233_v19 = vadd.s32 127, %v1232_v16 }
 0x4db   : > { %v1231_v54 = vor.u32 %v1230_v18, %v1229_v17  ;;  %v1234_v55 = vshll.u32 %v1233_v19, 23 }
 0x4dd   : > { %v1235_v21 = vor.u32 4788187, %v1234_v55  ;;  %v1238_v25 = vcvt.s32.f32 %v1231_v54  ;;  %v2767_v55 = vld [vmem:[#allocation8 + $0xe0] sm:$0xff]  }
 0x4de   : > { %2561 = vmatprep.subr.bf16.mxu1 %v2767_v55 }
 0x4df   : > { %v1236_v23 = vand.u32 2147483647, %v1235_v21  ;;  %v2768_v21 = vld [vmem:[#allocation8 + $0x140] sm:$0xff]  }
 0x4e0   : > { %2575 = vmatprep.subr.bf16.mxu0 %v2768_v21 }
 0x4e1   : > { %v1239_v27 = vmul.f32 %v1238_v25, %v1236_v23  ;;  %v2769_v23 = vld [vmem:[#allocation8 + $0xa0] sm:$0xff]  }
 0x4e2   : > { %2562 = vmatpush3.bf16.msra.mxu1 %v2769_v23  ;;  %v2789_v23 = vld [vmem:[#allocation8 + $0x168] sm:$0xff]  }
 0x4e3   : > { %v1240_v30 = vxor.u32 2147483648, %v1239_v27 }
 0x4e5   : > { %v1241_v22 = vsel %vm1158_vm13, %v1240_v30, %v1239_v27 }
 0x4e6   : > { %v1244_v33 = vsel %vm1157_vm14, %v3350_v13, %v1241_v22 }
 0x4e7   : > { %2821 = vcosq.f32 %v1244_v33 }
 0x4e8   : > { %2823 = vsinq.f32 %v1244_v33  ;;  %v2771_v33 = vld [vmem:[#allocation8 + $0xe8] sm:$0xff]  }
 0x4e9   : > { %2563 = vmatprep.subr.bf16.mxu1 %v2771_v33  ;;  %v2795_v33 = vld [vmem:[#allocation8 + $0x170] sm:$0xff]  }
 0x4ea   : > { %2564 = vmatpush3.bf16.msra.mxu1 %v2773_v35 }
 0x4eb   : > { %2565 = vmatprep.subr.bf16.mxu1 %v2775_v47  ;;  %v2804_v47 = vld [vmem:[#allocation8 + $0x198] sm:$0xff]  }
 0x4ee   : > { %2566 = vmatpush3.bf16.msra.mxu1 %v2777_v48  ;;  %v2805_v48 = vld [vmem:[#allocation8 + $0x1e0] sm:$0xff]  }
 0x4f1   : > { %v2822_v41 = vpop.eup %2821 }
 0x4f2   : > { %v2824_v45 = vpop.eup %2823  ;;  %v1255_v46 = vxor.u32 2147483648, %v2822_v41 }
 0x4f3   : > { %v1252_v24 = vxor.u32 2147483648, %v2824_v45 }
 0x4f4   : > { %v1256_v28 = vsel %vm1254_vm15, %v1255_v46, %v2824_v45  ;;  %v1360_v49 = vsel %vm1358_vm0, %v1255_v46, %v2824_v45 }
 0x4f5   : > { %v1253_v50 = vsel %vm1251_vm1, %v2822_v41, %v1252_v24  ;;  %v1357_v51 = vsel %vm1355_vm2, %v2822_v41, %v1252_v24 }
 0x4f6   : > { %v1257_v52 = vsel %vm1250_vm3, %v1253_v50, %v1256_v28  ;;  %v1361_v37 = vsel %vm1354_vm4, %v1357_v51, %v1360_v49  ;;  %v2779_v51 = vld [vmem:[#allocation8 + $0xf8] sm:$0xff]  }
 0x4f7   : > { %v3382_v53 = vsel %vm1248_vm5, nan, %v1257_v52  ;;  %v3384_v40 = vsel %vm1248_vm5, nan, %v1361_v37  ;;  %2567 = vmatprep.subr.bf16.mxu1 %v2779_v51  ;;  %v2811_v51 = vld [vmem:[#allocation8 + $0x1f8] sm:$0xff]  }
 0x4f8   : > { %v1368_v56 = vmul.f32 %v3382_v53, %v3382_v53  ;;  %v1369_v57 = vmul.f32 %v3384_v40, %v3384_v40  ;;  %v1371_v58 = vmul.f32 %v3384_v40, %v3382_v53  ;;  %v1363_v15 = vpack.c.bf16 %v3382_v53, %v3382_v53  ;;  %2568 = vmatpush3.bf16.msra.mxu1 %v2781_v34  ;;  %v2812_v34 = vld [vmem:[#allocation8 + $0x1b8] sm:$0xff]  }
 0x4f9   : > { %v1366_v13 = vpack.c.bf16 %v3384_v40, %v3384_v40 }
 0x4fa   : > { %v1370_v59 = vsub.f32 %v1368_v56, %v1369_v57  ;;  %v3396_v60 = vadd.f32 %v1371_v58, %v1371_v58  ;;  %1365 = vst.msk [vmem:[#allocation2] sm:$0xf] %vm1364_vm6, %v1363_v15 }
 0x4fb   : > { %1367 = vst.msk [vmem:[#allocation2 + $0x10] sm:$0xf] %vm1364_vm6, %v1366_v13  ;;  %v2786_v13 = vld [vmem:[#allocation8 + $0x1c0] sm:$0xff]  }
 0x4fc   : > { %v2479_v2 = vpack.c.bf16 %v1370_v59, %v1370_v59  ;;  %v1390_v3 = vmul.f32 %v1370_v59, %v3382_v53  ;;  %v1394_v4 = vmul.f32 %v1370_v59, %v3384_v40  ;;  %v1391_v5 = vmul.f32 %v3396_v60, %v3384_v40  ;;  %2597 = vmatprep.subr.bf16.mxu1 %v2786_v13  ;;  %v2390_v13 = vld [vmem:[%s3517_s8] ss:$0 sm:$0xff] }
 0x4fd   : > { %v1393_v6 = vmul.f32 %v3396_v60, %v3382_v53  ;;  %v2480_v37 = vpack.c.bf16 %v3396_v60, %v3396_v60 }
 0x4fe   : > { %1377 = vrot.lane.b32.xlu0 %v2479_v2, %s2995_s20  ;;  %v1392_v8 = vsub.f32 %v1390_v3, %v1391_v5 }
 0x4ff   : > { %v1395_v10 = vadd.f32 %v1394_v4, %v1393_v6  ;;  %v2770_v6 = vld [vmem:[#allocation8 + $0x100] sm:$0xff]  }
 0x500   : > { %v1400_v11 = vmul.f32 %v1392_v8, %v3382_v53  ;;  %v1404_v12 = vmul.f32 %v1392_v8, %v3384_v40  ;;  %v1396_v14 = vpack.c.bf16 %v1392_v8, %v1392_v8 }
 0x501   : > { %v1401_v16 = vmul.f32 %v1395_v10, %v3384_v40  ;;  %v1403_v17 = vmul.f32 %v1395_v10, %v3382_v53  ;;  %v1398_v18 = vpack.c.bf16 %v1395_v10, %v1395_v10  ;;  %v2776_v10 = vld [vmem:[#allocation8 + $0x150] sm:$0xff]  }
 0x502   : > { %1397 = vst.msk [vmem:[#allocation2 + $0x4] sm:$0xf] %vm1364_vm6, %v1396_v14 }
 0x503   : > { %v1402_v19 = vsub.f32 %v1400_v11, %v1401_v16  ;;  %v3412_v54 = vadd.f32 %v1404_v12, %v1403_v17  ;;  %1399 = vst.msk [vmem:[#allocation2 + $0x14] sm:$0xf] %vm1364_vm6, %v1398_v18  ;;  %v2778_v12 = vld [vmem:[#allocation8 + $0x110] sm:$0xff]   ;;  %v2780_v16 = vld [vmem:[#allocation8 + $0x158] sm:$0xff]  }
 0x504   : > { %v2782_v17 = vld [vmem:[#allocation8 + $0x118] sm:$0xff]  }
 0x505   : > { %v2481_v25 = vpack.c.bf16 %v1402_v19, %v1402_v19  ;;  %v1422_v27 = vmul.f32 %v1402_v19, %v3382_v53  ;;  %v1426_v29 = vmul.f32 %v1402_v19, %v3384_v40  ;;  %v1423_v30 = vmul.f32 %v3412_v54, %v3384_v40  ;;  %v2785_v19 = vld [vmem:[#allocation8 + $0x160] sm:$0xff]  }
 0x506   : > { %v1425_v22 = vmul.f32 %v3412_v54, %v3382_v53  ;;  %v2482_v26 = vpack.c.bf16 %v3412_v54, %v3412_v54  ;;  %v2787_v54 = vld [vmem:[#allocation8 + $0x120] sm:$0xff]  }
 0x507   : > { %1410 = vrot.lane.b32.xlu1 %v2481_v25, %s2995_s20  ;;  %v1424_v32 = vsub.f32 %v1422_v27, %v1423_v30  ;;  %v2792_v30 = vld [vmem:[#allocation8 + $0x1c8] sm:$0xff]  }
 0x508   : > { %v1427_v36 = vadd.f32 %v1426_v29, %v1425_v22  ;;  %v2788_v29 = vld [vmem:[#allocation8 + $0x180] sm:$0xff]   ;;  %v2793_v22 = vld [vmem:[#allocation8 + $0x128] sm:$0xff]  }
 0x509   : > { %v1428_v38 = vpack.c.bf16 %v1424_v32, %v1424_v32  ;;  %v1432_v39 = vmul.f32 %v1424_v32, %v3382_v53  ;;  %v1436_v41 = vmul.f32 %v1424_v32, %v3384_v40 }
 0x50a   : > { %v1433_v42 = vmul.f32 %v1427_v36, %v3384_v40  ;;  %v1435_v43 = vmul.f32 %v1427_v36, %v3382_v53  ;;  %v1430_v44 = vpack.c.bf16 %v1427_v36, %v1427_v36  ;;  %v2794_v36 = vld [vmem:[#allocation8 + $0x188] sm:$0xff]  }
 0x50b   : > { %1429 = vst.msk [vmem:[#allocation2 + $0x8] sm:$0xf] %vm1364_vm6, %v1428_v38  ;;  %v2796_v38 = vld [vmem:[#allocation8 + $0x1d0] sm:$0xff]  }
 0x50c   : > { %v1434_v45 = vsub.f32 %v1432_v39, %v1433_v42  ;;  %v1437_v46 = vadd.f32 %v1436_v41, %v1435_v43  ;;  %1431 = vst.msk [vmem:[#allocation2 + $0x18] sm:$0xf] %vm1364_vm6, %v1430_v44  ;;  %v2799_v39 = vld [vmem:[#allocation8 + $0x130] sm:$0xff]   ;;  %v2801_v42 = vld [vmem:[#allocation8 + $0x178] sm:$0xff]  }
 0x50d   : > { %v2800_v44 = vld [vmem:[#allocation8 + $0x190] sm:$0xff]  }
 0x50e   : > { %v2483_v20 = vpack.c.bf16 %v1434_v45, %v1434_v45  ;;  %v1454_v24 = vmul.f32 %v1434_v45, %v3382_v53  ;;  %v1455_v28 = vmul.f32 %v1437_v46, %v3384_v40  ;;  %v1457_v49 = vmul.f32 %v1437_v46, %v3382_v53 }
 0x50f   : > { %v1458_v31 = vmul.f32 %v1434_v45, %v3384_v40  ;;  %v2484_v61 = vpack.c.bf16 %v1437_v46, %v1437_v46  ;;  %v2802_v45 = vld [vmem:[#allocation8 + $0x1d8] sm:$0xff]  }
 0x510   : > { %1442 = vrot.lane.b32.xlu1 %v2483_v20, %s2995_s20  ;;  %v1456_v50 = vsub.f32 %v1454_v24, %v1455_v28  ;;  %v2803_v46 = vld [vmem:[#allocation8 + $0x138] sm:$0xff]   ;;  %v2806_v24 = vld [vmem:[#allocation8 + $0x1a0] sm:$0xff]   ;;  %v2807_v28 = vld [vmem:[#allocation8 + $0x1e8] sm:$0xff]  }
 0x511   : > { %v1459_v52 = vadd.f32 %v1458_v31, %v1457_v49  ;;  %v2808_v49 = vld [vmem:[#allocation8 + $0x1a8] sm:$0xff]   ;;  %v2809_v31 = vld [vmem:[#allocation8 + $0x1f0] sm:$0xff]  }
 0x512   : > { %v1460_v56 = vpack.c.bf16 %v1456_v50, %v1456_v50  ;;  %v1464_v57 = vmul.f32 %v1456_v50, %v3382_v53  ;;  %v1468_v63 = vmul.f32 %v1456_v50, %v3384_v40  ;;  %v2810_v50 = vld [vmem:[#allocation8 + $0x1b0] sm:$0xff]  }
 0x513   : > { %v1465_v58 = vmul.f32 %v1459_v52, %v3384_v40  ;;  %v1462_v15 = vpack.c.bf16 %v1459_v52, %v1459_v52  ;;  %v1467_v60 = vmul.f32 %v1459_v52, %v3382_v53 }
 0x514   : > { %1386 = vrot.lane.b32.xlu1 %v2480_v37, %s2995_s20  ;;  %1461 = vst.msk [vmem:[#allocation2 + $0xc] sm:$0xf] %vm1364_vm6, %v1460_v56 }
 0x515   : > { %v1466_v59 = vsub.f32 %v1464_v57, %v1465_v58  ;;  %1463 = vst.msk [vmem:[#allocation2 + $0x1c] sm:$0xf] %vm1364_vm6, %v1462_v15  ;;  %v1469_v0 = vadd.f32 %v1468_v63, %v1467_v60 }
 0x517   : > { %v2485_v62 = vpack.c.bf16 %v1466_v59, %v1466_v59  ;;  %v2486_v1 = vpack.c.bf16 %v1469_v0, %v1469_v0 }
 0x518   : > { %1450 = vrot.lane.b32.xlu1 %v2484_v61, %s2995_s20 }
 0x519   : > { %1474 = vrot.lane.b32.xlu0 %v2485_v62, %s2995_s20 }
 0x51d   : > { %1418 = vrot.lane.b32.xlu0 %v2482_v26, %s2995_s20 }
 0x521   : > { %1482 = vrot.lane.b32.xlu0 %v2486_v1, %s2995_s20  ;;  %s376_s20 = scalar_lea.vmem [#allocation9], %s2309_s18  ;;  %s2997_s18 = smov [#allocation9]  }
 0x522   : > { %s2212_s22 = sshll.u32 %s376_s20, 4  ;;  %s2915_s15 = sshll.u32 %s2997_s18, 4  ;;  %s3467_s22 = int_to_ptr.vmem [resolvable:$true] %s2212_s22  ;;  %s2916_s15 = int_to_ptr.vmem [resolvable:$false] %s2915_s15 }
 0x523   : > { %s2911_s13 = scalar_lea.vmem %s3467_s22, 128  ;;  %s2917_s17 = scalar_lea.vmem %s2916_s15, 256 }
 0x524   : > { %p2912_p11 = scmp.ne.s32.totalorder %s3467_s22, %s2911_s13  ;;  %p2918_p7 = scmp.lt.s32.totalorder %s3467_s22, %s2916_s15 }
 0x525   : > { %p2919_p9 = scmp.lt.s32.totalorder %s2917_s17, %s2911_s13 }
 0x526   : > { %p2913_p1 = pnand %p2912_p11, %p3534_p0 }
 0x527   : > { %p2920_p12 = por %p2919_p9, %p2918_p7 }
 0x528   : > { %p2914_p3 = pneg %p2913_p1 }
 0x52a   : > { %p2921_p2 = pnand %p2920_p12, %p2914_p3 }
 0x570   : > { %v1378_v2 = vpop.permute.xlu0 %1377 }
 0x571   : > { %1381 = vst.msk [vmem:[#allocation2] sm:$0xf] %vm1380_vm7, %v1378_v2 }
 0x579   : > { %v1411_v53 = vpop.permute.xlu1 %1410 }
 0x57a   : > { %1413 = vst.msk [vmem:[#allocation2 + $0x4] sm:$0xf] %vm1380_vm7, %v1411_v53 }
 0x581   : > { %v1486_v40 = vld [vmem:[#allocation2] sm:$0xff] }
 0x582   : > { %v1443_v3 = vpop.permute.xlu1 %1442  ;;  %v2391_v4 = vcombine.low %v1486_v40, %v1486_v40  ;;  %v2392_v5 = vcombine.high %v1486_v40, %v1486_v40 }
 0x583   : > { %1445 = vst.msk [vmem:[#allocation2 + $0x8] sm:$0xf] %vm1380_vm7, %v1443_v3 }
 0x584   : > { %2069 = vmatprep.mubr.bf16.mxu0 %v2392_v5 }
 0x585   : > { %2070 = vmatmul.mubr.bf16.vlgmr.msra.gmra.mrb[4].mxu0 %v2391_v4 }
 0x586   : > { %v1387_v8 = vpop.permute.xlu1 %1386  ;;  %2576 = vmatpush3.bf16.msra.mxu0 %v2770_v6 }
 0x587   : > { %1389 = vst.msk [vmem:[#allocation2 + $0x10] sm:$0xf] %vm1380_vm7, %v1387_v8  ;;  %2577 = vmatprep.subr.bf16.mxu0 %v2772_v7 }
 0x58a   : > { %v1451_v11 = vpop.permute.xlu1 %1450  ;;  %2578 = vmatpush3.bf16.msra.mxu0 %v2774_v9 }
 0x58b   : > { %1453 = vst.msk [vmem:[#allocation2 + $0x18] sm:$0xf] %vm1380_vm7, %v1451_v11  ;;  %v1475_v14 = vpop.permute.xlu0 %1474  ;;  %2579 = vmatprep.subr.bf16.mxu0 %v2776_v10 }
 0x58c   : > { %1477 = vst.msk [vmem:[#allocation2 + $0xc] sm:$0xf] %vm1380_vm7, %v1475_v14 }
 0x58e   : > { %2580 = vmatpush3.bf16.msra.mxu0 %v2778_v12 }
 0x58f   : > { %v1419_v18 = vpop.permute.xlu0 %1418  ;;  %2581 = vmatprep.subr.bf16.mxu0 %v2780_v16 }
 0x590   : > { %1421 = vst.msk [vmem:[#allocation2 + $0x14] sm:$0xf] %vm1380_vm7, %v1419_v18 }
 0x592   : > { %2582 = vmatpush3.bf16.msra.mxu0 %v2782_v17 }
 0x593   : > { %v1483_v55 = vpop.permute.xlu0 %1482  ;;  %v1487_v21 = vld [vmem:[#allocation2 + $0x8] sm:$0xff]  ;;  %2583 = vmatprep.subr.bf16.mxu0 %v2785_v19 }
 0x594   : > { %1485 = vst.msk [vmem:[#allocation2 + $0x1c] sm:$0xf] %vm1380_vm7, %v1483_v55  ;;  %v2393_v25 = vcombine.low %v1487_v21, %v1487_v21  ;;  %v2394_v27 = vcombine.high %v1487_v21, %v1487_v21 }
 0x596   : > { %2109 = vmatprep.mubr.bf16.mxu1 %v2394_v27  ;;  %2584 = vmatpush3.bf16.msra.mxu0 %v2787_v54 }
 0x597   : > { %2110 = vmatmul.mubr.bf16.vlgmr.msra.gmra.mrb[4].mxu1 %v2393_v25  ;;  %2585 = vmatprep.subr.bf16.mxu0 %v2789_v23  ;;  %v1488_v32 = vld [vmem:[#allocation2 + $0x10] sm:$0xff] }
 0x598   : > { %2598 = vmatpush3.bf16.msra.mxu1 %v2788_v29  ;;  %v2396_v35 = vcombine.high %v1488_v32, %v1488_v32  ;;  %v2395_v20 = vcombine.low %v1488_v32, %v1488_v32 }
 0x599   : > { %2599 = vmatprep.subr.bf16.mxu1 %v2792_v30 }
 0x59a   : > { %2149 = vmatprep.mubr.bf16.mxu0 %v2396_v35  ;;  %2586 = vmatpush3.bf16.msra.mxu0 %v2793_v22 }
 0x59b   : > { %2587 = vmatprep.subr.bf16.mxu0 %v2795_v33  ;;  %v1489_v41 = vld [vmem:[#allocation2 + $0x18] sm:$0xff] }
 0x59c   : > { %2600 = vmatpush3.bf16.msra.mxu1 %v2794_v36  ;;  %v2398_v43 = vcombine.high %v1489_v41, %v1489_v41  ;;  %v2397_v52 = vcombine.low %v1489_v41, %v1489_v41 }
 0x59d   : > { %2601 = vmatprep.subr.bf16.mxu1 %v2796_v38 }
 0x59e   : > { %2189 = vmatprep.mubr.bf16.mxu1 %v2398_v43  ;;  %2588 = vmatpush3.bf16.msra.mxu0 %v2799_v39 }
 0x59f   : > { %2589 = vmatprep.subr.bf16.mxu0 %v2801_v42 }
 0x5a0   : > { %2602 = vmatpush3.bf16.msra.mxu1 %v2800_v44 }
 0x5a1   : > { %2603 = vmatprep.subr.bf16.mxu1 %v2802_v45 }
 0x5a2   : > { %2590 = vmatpush3.bf16.msra.mxu0 %v2803_v46 }
 0x5a4   : > { %2604 = vmatpush3.bf16.msra.mxu1 %v2804_v47 }
 0x5a5   : > { %2150 = vmatmul.mubr.bf16.vlgmr.msra.gmra.mrb[8].mxu0 %v2395_v20  ;;  %2605 = vmatprep.subr.bf16.mxu1 %v2805_v48 }
 0x5a8   : > { %2606 = vmatpush3.bf16.msra.mxu1 %v2806_v24 }
 0x5a9   : > { %2607 = vmatprep.subr.bf16.mxu1 %v2807_v28 }
 0x5ac   : > { %2608 = vmatpush3.bf16.msra.mxu1 %v2808_v49 }
 0x5ad   : > { %2609 = vmatprep.subr.bf16.mxu1 %v2809_v31 }
 0x5b0   : > { %2610 = vmatpush3.bf16.msra.mxu1 %v2810_v50 }
 0x5b1   : > { %2611 = vmatprep.subr.bf16.mxu1 %v2811_v51 }
 0x5b4   : > { %2612 = vmatpush3.bf16.msra.mxu1 %v2812_v34 }
 0x5b7   : > { %2190 = vmatmul.mubr.bf16.vlgmr.msra.gmra.mrb[8].mxu1 %v2397_v52 }
 0x658   : > { %v2547_v37 = vpop.f32.mrb[4].mxu0 }
 0x659   : > { %v2548_v56 = vpop.f32.mrb[5].mxu0 }
 0x65a   : > { %v2549_v57 = vadd.f32 %v2548_v56, %v2547_v37  ;;  %v2550_v58 = vpop.f32.mrb[6].mxu0 }
 0x65b   : > { %v2551_v15 = vpop.f32.mrb[7].mxu0 }
 0x65c   : > { %v2072_v62 = vadd.f32 %v2549_v57, %v2390_v13 }
 0x66a   : > { %v2569_v59 = vpop.f32.mrb[4].mxu1 }
 0x66b   : > { %v2570_v61 = vpop.f32.mrb[5].mxu1 }
 0x66c   : > { %v2571_v60 = vadd.f32 %v2570_v61, %v2569_v59  ;;  %v2572_v63 = vpop.f32.mrb[6].mxu1 }
 0x66d   : > { %v2573_v26 = vpop.f32.mrb[7].mxu1 }
 0x66e   : > { %v2112_v0 = vadd.f32 %v2571_v60, %v2072_v62 }
 0x678   : > { %v2591_v1 = vpop.f32.mrb[8].mxu0 }
 0x679   : > { %v2592_v2 = vpop.f32.mrb[9].mxu0 }
 0x67a   : > { %v2593_v53 = vadd.f32 %v2592_v2, %v2591_v1  ;;  %v2594_v40 = vpop.f32.mrb[10].mxu0 }
 0x67b   : > { %v2595_v3 = vpop.f32.mrb[11].mxu0 }
 0x67c   : > { %v2152_v4 = vadd.f32 %v2593_v53, %v2112_v0 }
 0x68a   : > { %v2613_v5 = vpop.f32.mrb[8].mxu1 }
 0x68b   : > { %v2614_v6 = vpop.f32.mrb[9].mxu1 }
 0x68c   : > { %v2615_v7 = vadd.f32 %v2614_v6, %v2613_v5  ;;  %v2616_v8 = vpop.f32.mrb[10].mxu1 }
 0x68d   : > { %v2617_v9 = vpop.f32.mrb[11].mxu1 }
 0x68e   : > { %v2192_v10 = vadd.f32 %v2615_v7, %v2152_v4 }
 0x690   : > { %2197 = vst [vmem:[%s376_s20] sm:$0xff] %v2192_v10 }
 0x691   : > { %2924 = shalt.err (!%p2921_p2)
}
 0x692   : > { %s2925_s25 = scalar_lea.hbm %s3465_s19, 128  ;;  %s2929_s23 = scalar_lea.hbm %s3518_s9, 256 }
 0x693   : > { %p2926_p13 = scmp.ne.s32.totalorder %s3465_s19, %s2925_s25  ;;  %p2930_p4 = scmp.lt.u32.totalorder %s3465_s19, %s3518_s9 }
 0x694   : > { %p2931_p5 = scmp.lt.u32.totalorder %s2929_s23, %s2925_s25  ;;  %p2933_p11 = scmp.lt.u32.totalorder %s2925_s25, %s3465_s19 }
 0x695   : > { %p2927_p6 = pnand %p2926_p13, %p3534_p0 }
 0x696   : > { %p2932_p8 = por %p2931_p5, %p2930_p4 }
 0x697   : > { %p2928_p10 = pneg %p2927_p6 }
 0x698   : > { %p2934_p1 = por %p2933_p11, %p2932_p8 }
 0x69a   : > { %p2935_p3 = pnand %p2934_p1, %p2928_p10 }
 0x69c   : > { %2938 = shalt.err (!%p2935_p3)
}
 0x69d   : > { %2637 = dma.vmem_to_hbm [thread:$0]  (%p3534_p0), %s3467_s22, 128, %s3465_s19, %s2199_s28  }
 0x69e PF: > { %s3535_s21 = sld [smem:[#allocation13_spill]]  ;;  %s2224_s13 = sand.u32 1, %s2969_s30  }
 0x69f   : > { %p3537_p9 = scmp.ge.s32.totalorder %s2981_s12, 2  ;;  %s2225_s18 = scalar_lea.sflag [#allocation5], %s2224_s13 }
 0x6a4   : > { %p3536_p7 = scmp.ne.s32.totalorder %s3535_s21, 0 }
 0x6a6   : > { %p2651_p12 = pnand %p3537_p9, %p3536_p7 }
 0x6a8   : > { %2964 = dma.done.wait (!%p2651_p12), %s2225_s18, 128  }
 0x6a9   : > { %2966 = vsyncadd (!%p2651_p12), %s2225_s18, 4294967168  ;;  %p23_p2 = scmp.ge.s32.totalorder %s3158_s24, 4   ;;  %s3538_s30 = smov %s2973_s10 }
 0x6aa   : > { %s3539_s10 = smov %s2977_s11  ;;  %s3540_s11 = smov %s3174_s27 }
 0x6ab   : > { %s3541_s12 = smov %s3158_s24  ;;  %25 = sbr.rel (!%p23_p2) target bundleno = 6 (0x6), region = 109 }
 0x6b2   :  { %2230 = vsyncpa [#allocation4], 1 }
 0x6b3   :  { %2232 = vsyncpa [#allocation4 + $0x1], 1 }
 0x6b4   :  { %2233 = vsyncpa [#allocation7], 1 }
 0x6b5   :  { %2234 = vsyncpa [#allocation5], 1 }
 0x6b6   :  { %2236 = vsyncpa [#allocation5 + $0x1], 1 }

</bundles_post_ra>
